<compile_context>
chip_gen: v6e
topology: v6e:2x2x1
jax: 0.10.0
libtpu: 0.0.40
codegen_flags: <defaults>
</compile_context>

<pallas_src>
import functools

import jax
import jax.numpy as jnp
from jax import lax
from jax.experimental import pallas as pl
from jax.experimental.pallas import tpu as pltpu


# ----------------------------------------------------------------------------
# Fused Pallas kernel (all layers + label head, single invocation)
# ----------------------------------------------------------------------------
def _make_fused_kernel(num_layers, T_pad, t_chunk, B_pad, H):
    """Builds the fused kernel body for fixed (num_layers, T_pad, t_chunk, B_pad, H)."""
    num_chunks = T_pad // t_chunk
    chunk_rows = t_chunk * B_pad

    def kernel(bs_ref, x_ref, *args):
        # args layout:
        #   [w_ih, w_hh, b] * num_layers, w_label, b_label,        (inputs)
        #   out_ref,                                                (output)
        #   xproj_scr, (hseq_scr if num_layers > 1)                 (scratch)
        n_w = 3 * num_layers + 2
        w_refs = args[:n_w]
        out_ref = args[n_w]
        scratch = args[n_w + 1:]
        xproj_scr = scratch[0]
        hseq_scr = scratch[1] if num_layers > 1 else None
        wlab_ref, blab_ref = w_refs[-2], w_refs[-1]

        # Sublane row ids, compared against batch_sizes[t] (packed-seq mask).
        row_ids = lax.broadcasted_iota(jnp.int32, (B_pad, 1), 0)

        h_last = None
        for layer in range(num_layers):
            wih_ref = w_refs[3 * layer]
            whh_ref = w_refs[3 * layer + 1]
            b_ref = w_refs[3 * layer + 2]
            w_dtype = whh_ref.dtype
            is_last = layer == num_layers - 1

            bias = b_ref[...]                              # (1, 4H) f32, hoisted

            # h / c live as loop-carried values (register resident), NOT VMEM.
            h = jnp.zeros((B_pad, H), jnp.float32)
            c = jnp.zeros((B_pad, H), jnp.float32)

            for chunk in range(num_chunks):
                row0 = chunk * chunk_rows                  # static

                # Chunked hoisted input projection: one (chunk_rows, E_in) x
                # (E_in, 4H) MXU matmul per chunk (+bias), scratch flat in T.
                if layer == 0:
                    x_in = x_ref[pl.ds(row0, chunk_rows), :]
                else:
                    x_in = hseq_scr[pl.ds(row0, chunk_rows), :].astype(w_dtype)
                xproj_scr[...] = (
                    jnp.dot(x_in, wih_ref[...],
                            preferred_element_type=jnp.float32) + bias)

                def step(lt, carry):
                    h_prev, c_prev = carry                 # (B_pad, H) f32 vregs
                    r = pl.multiple_of(lt * B_pad, B_pad)  # sublane-aligned row
                    t = chunk * t_chunk + lt               # global time index
                    gates = (xproj_scr[pl.ds(r, B_pad), :]
                             + jnp.dot(h_prev.astype(w_dtype), whh_ref[...],
                                       preferred_element_type=jnp.float32))
                    # Gate columns were reordered to (i, f, o | g):
                    #   one sigmoid on a contiguous 3H slab + one tanh on H.
                    # (Slab boundaries are only lane-tile aligned when H % 128
                    #  == 0; at small H the EUP has slack anyway.)
                    sfo = jax.nn.sigmoid(gates[:, :3 * H])
                    g_g = jnp.tanh(gates[:, 3 * H:])
                    i_g = sfo[:, 0:H]
                    f_g = sfo[:, H:2 * H]
                    o_g = sfo[:, 2 * H:3 * H]
                    c_new = f_g * c_prev + i_g * g_g
                    h_new = o_g * jnp.tanh(c_new)
                    # packed-sequence semantics: rows [0, batch_sizes[t])
                    # active; state frozen past each sequence's length.
                    valid = row_ids < bs_ref[t]
                    h_upd = jnp.where(valid, h_new, h_prev)
                    c_upd = jnp.where(valid, c_new, c_prev)
                    if not is_last:
                        # Hidden sequence feeds the next layer; skipped for the
                        # last layer (only its final hidden is needed).
                        rg = pl.multiple_of(row0 + lt * B_pad, B_pad)
                        hseq_scr[pl.ds(rg, B_pad), :] = h_upd
                    return (h_upd, c_upd)

                # Moderate unroll: enough LLO visibility, no instruction blowup.
                h, c = lax.fori_loop(0, t_chunk, step, (h, c),
                                     unroll=min(t_chunk, 8))
            h_last = h

        # Fused label head on the final hidden state of the last layer.
        out_ref[...] = (
            jnp.dot(h_last.astype(wlab_ref.dtype), wlab_ref[...],
                    preferred_element_type=jnp.float32)
            + blab_ref[...])

    return kernel


# ----------------------------------------------------------------------------
# Parameters
# ----------------------------------------------------------------------------
def init_params(key, output_size, hidden_size, vocab_size, embedding_length,
                num_layers):
    """Deterministic synthetic parameters (matmul weights stored pre-transposed,
    PyTorch gate order i, f, g, o)."""
    params = {}
    key, k = jax.random.split(key)
    params["emb"] = jax.random.normal(
        k, (vocab_size, embedding_length), jnp.float32) * 0.1
    params["layers"] = []
    for layer in range(num_layers):
        in_dim = embedding_length if layer == 0 else hidden_size
        key, k1, k2, k3, k4 = jax.random.split(key, 5)
        w_ih_t = jax.random.normal(k1, (in_dim, 4 * hidden_size),
                                   jnp.float32) * 0.1
        w_hh_t = jax.random.normal(k2, (hidden_size, 4 * hidden_size),
                                   jnp.float32) * 0.1
        b_ih = jax.random.normal(k3, (4 * hidden_size,), jnp.float32) * 0.1
        b_hh = jax.random.normal(k4, (4 * hidden_size,), jnp.float32) * 0.1
        params["layers"].append((w_ih_t, w_hh_t, (b_ih + b_hh)[None, :]))
    key, k1, k2 = jax.random.split(key, 3)
    params["w_label_t"] = jax.random.normal(
        k1, (hidden_size, output_size), jnp.float32) * 0.1
    params["b_label"] = jax.random.normal(k2, (output_size,), jnp.float32) * 0.1
    return params


# ----------------------------------------------------------------------------
# Forward wrapper
# ----------------------------------------------------------------------------
@functools.partial(jax.jit,
                   static_argnames=("num_layers", "matmul_dtype", "t_chunk"))
def lstm_sarcasm_forward(params, tweet, tweet_batch_len, *, num_layers,
                         matmul_dtype=jnp.float32, t_chunk=32):
    """tweet: (B, T) int32 token ids; tweet_batch_len: (B,) int32 lengths
    sorted in decreasing order (enforce_sorted=True).
    Returns (B,) float32 logits — matches torch forward with output_size=1.

    matmul_dtype=jnp.bfloat16 is recommended on all TPU generations (MXU is
    bf16-native on v5e too); gate / cell-state math always stays f32.
    Note: larger B (more sequences per call) raises the effective M of the
    recurrent matmul — extra rows ride the MXU nearly free up to ~128/256."""
    emb = jnp.take(params["emb"], tweet, axis=0)          # (B, T, E)   glue
    B, T, E = emb.shape
    H = params["layers"][0][1].shape[0]
    O = params["w_label_t"].shape[1]
    B_pad = max(8, -(-B // 8) * 8)                        # >= 8 f32 sublanes

    # Time-chunk size for the hoisted input projection (VMEM flat in T).
    t_chunk = min(int(t_chunk), T)
    T_pad = -(-T // t_chunk) * t_chunk                    # pad T to chunk mult

    x = jnp.transpose(emb, (1, 0, 2))                     # (T, B, E) time-major
    x = jnp.pad(x, ((0, T_pad - T), (0, B_pad - B), (0, 0)))
    x_flat = x.reshape(T_pad * B_pad, E).astype(matmul_dtype)

    lengths = tweet_batch_len.astype(jnp.int32)
    # pack_padded_sequence batch_sizes: #sequences still active at step t.
    # Padded timesteps get 0 -> state frozen, exactly packed-seq semantics.
    batch_sizes = jnp.sum(
        lengths[None, :] > jnp.arange(T_pad, dtype=jnp.int32)[:, None],
        axis=1).astype(jnp.int32)                         # (T_pad,) -> SMEM

    def reorder_gates(w):  # columns (..., 4H): (i, f, g, o) -> (i, f, o, g)
        return jnp.concatenate(
            [w[..., :2 * H], w[..., 3 * H:4 * H], w[..., 2 * H:3 * H]],
            axis=-1)

    flat_inputs = [batch_sizes, x_flat]
    for w_ih_t, w_hh_t, b_row in params["layers"]:
        flat_inputs += [reorder_gates(w_ih_t).astype(matmul_dtype),
                        reorder_gates(w_hh_t).astype(matmul_dtype),
                        reorder_gates(b_row).astype(jnp.float32)]
    flat_inputs += [params["w_label_t"].astype(matmul_dtype),
                    params["b_label"][None, :].astype(jnp.float32)]

    scratch = [pltpu.VMEM((t_chunk * B_pad, 4 * H), jnp.float32)]   # xproj chunk
    if num_layers > 1:
        scratch.append(pltpu.VMEM((T_pad * B_pad, H), jnp.float32))  # inter-layer h

    # Scoped-VMEM limit sized from actual operands + scratch (2x headroom),
    # capped at 64 MiB so it is valid on v7x physical VMEM.
    op_bytes = sum(int(a.size) * a.dtype.itemsize for a in flat_inputs)
    op_bytes += B_pad * O * 4                                        # output
    scr_bytes = t_chunk * B_pad * 4 * H * 4
    if num_layers > 1:
        scr_bytes += T_pad * B_pad * H * 4
    vmem_limit = int(min(64 * 1024 * 1024,
                         max(16 * 1024 * 1024,
                             2 * (op_bytes + scr_bytes) + (1 << 20))))

    smem = pl.BlockSpec(memory_space=pltpu.MemorySpace.SMEM)
    vmem = pl.BlockSpec(memory_space=pltpu.MemorySpace.VMEM)

    out = pl.pallas_call(
        _make_fused_kernel(num_layers, T_pad, t_chunk, B_pad, H),
        out_shape=jax.ShapeDtypeStruct((B_pad, O), jnp.float32),
        in_specs=[smem] + [vmem] * (len(flat_inputs) - 1),
        out_specs=vmem,
        scratch_shapes=scratch,
        compiler_params=pltpu.CompilerParams(vmem_limit_bytes=vmem_limit),
    )(*flat_inputs)

    logits = out[:B]                                      # drop batch padding
    return jnp.squeeze(logits, axis=1) if O == 1 else logits


# ----------------------------------------------------------------------------
# Pure-JAX reference (same math, no Pallas) for correctness checks
# ----------------------------------------------------------------------------
def ref_forward(params, tweet, tweet_batch_len, num_layers, hidden_size,
                matmul_dtype=jnp.float32):
    emb = jnp.take(params["emb"], tweet, axis=0)          # (B, T, E)
    x = jnp.transpose(emb, (1, 0, 2))                     # (T, B, E)
    T, B, _ = x.shape
    H = hidden_size
    lengths = tweet_batch_len.astype(jnp.int32)
    h_final = None
    for layer in range(num_layers):
        w_ih_t, w_hh_t, b_row = params["layers"][layer]
        w_ih = w_ih_t.astype(matmul_dtype)
        w_hh = w_hh_t.astype(matmul_dtype)
        h = jnp.zeros((B, H), jnp.float32)
        c = jnp.zeros((B, H), jnp.float32)
        outs = []
        for t in range(T):
            gates = (jnp.dot(x[t].astype(matmul_dtype), w_ih,
                             preferred_element_type=jnp.float32)
                     + jnp.dot(h.astype(matmul_dtype), w_hh,
                               preferred_element_type=jnp.float32)
                     + b_row)
            i_g = jax.nn.sigmoid(gates[:, 0 * H:1 * H])
            f_g = jax.nn.sigmoid(gates[:, 1 * H:2 * H])
            g_g = jnp.tanh(gates[:, 2 * H:3 * H])
            o_g = jax.nn.sigmoid(gates[:, 3 * H:4 * H])
            c_new = f_g * c + i_g * g_g
            h_new = o_g * jnp.tanh(c_new)
            valid = (lengths > t)[:, None]
            h = jnp.where(valid, h_new, h)
            c = jnp.where(valid, c_new, c)
            outs.append(h)
        x = jnp.stack(outs, axis=0).astype(jnp.float32)
        h_final = h
    logits = (jnp.dot(h_final.astype(matmul_dtype),
                      params["w_label_t"].astype(matmul_dtype),
                      preferred_element_type=jnp.float32)
              + params["b_label"][None, :])
    return jnp.squeeze(logits, axis=1)


# ----------------------------------------------------------------------------
if __name__ == "__main__":
    output_size = 1
    hidden_size = 32
    vocab_size = 50
    embedding_length = 32
    num_layers = 2          # bidirectional=False (module default)

    B, T = 4, 8

    key = jax.random.PRNGKey(0)
    key, k_tok = jax.random.split(key)
    params = init_params(key, output_size, hidden_size, vocab_size,
                         embedding_length, num_layers)

    tweet = jax.random.randint(k_tok, (B, T), 0, vocab_size, dtype=jnp.int32)
    # enforce_sorted=True -> lengths sorted in decreasing order
    tweet_batch_len = jnp.array([8, 6, 5, 3], dtype=jnp.int32)

    # f32 path: strict check against the pure-JAX reference.
    out = lstm_sarcasm_forward(params, tweet, tweet_batch_len,
                               num_layers=num_layers)
    out = jax.block_until_ready(out)
    ref = ref_forward(params, tweet, tweet_batch_len, num_layers, hidden_size)
    assert out.shape == (B,), out.shape
    assert jnp.allclose(out, ref, rtol=1e-4, atol=1e-4), (out, ref)

    # bf16 matmul path: bf16 MXU inputs, f32 accumulation and f32 gate/state
    # math (recurrent bf16 recast rounding should be re-validated at large T).
    out_bf16 = lstm_sarcasm_forward(params, tweet, tweet_batch_len,
                                    num_layers=num_layers,
                                    matmul_dtype=jnp.bfloat16)
    out_bf16 = jax.block_until_ready(out_bf16)
    ref_bf16 = ref_forward(params, tweet, tweet_batch_len, num_layers,
                           hidden_size, matmul_dtype=jnp.bfloat16)
    assert out_bf16.shape == (B,), out_bf16.shape
    assert bool(jnp.all(jnp.isfinite(out_bf16)))
    assert jnp.allclose(out_bf16, ref_bf16, rtol=2e-2, atol=2e-2), (
        out_bf16, ref_bf16)

    print("KERNEL_OK")
</pallas_src>

<mosaic_0001>
module attributes {stable_mosaic.version = 11 : i64} {
  func.func @kernel(%arg0: memref<8xi32, #tpu.memory_space<smem>>, %arg1: memref<64x32xf32, #tpu.memory_space<vmem>>, %arg2: memref<32x128xf32, #tpu.memory_space<vmem>>, %arg3: memref<32x128xf32, #tpu.memory_space<vmem>>, %arg4: memref<1x128xf32, #tpu.memory_space<vmem>>, %arg5: memref<32x128xf32, #tpu.memory_space<vmem>>, %arg6: memref<32x128xf32, #tpu.memory_space<vmem>>, %arg7: memref<1x128xf32, #tpu.memory_space<vmem>>, %arg8: memref<32x1xf32, #tpu.memory_space<vmem>>, %arg9: memref<1x1xf32, #tpu.memory_space<vmem>>, %arg10: memref<8x1xf32, #tpu.memory_space<vmem>>, %arg11: memref<64x128xf32, #tpu.memory_space<vmem>>, %arg12: memref<64x32xf32, #tpu.memory_space<vmem>>) attributes {dimension_semantics = [], scalar_prefetch = 0 : i64, scratch_operands = 2 : i64, tpu.core_type = #tpu.core_type<tc>} {
    %0 = tpu.iota {dimensions = array<i32: 0>} : vector<8x1xi32>
    %c0 = arith.constant 0 : index
    %c0_0 = arith.constant 0 : index
    %1 = vector.load %arg4[%c0, %c0_0] : memref<1x128xf32, #tpu.memory_space<vmem>>, vector<1x128xf32>
    %cst = arith.constant 0.000000e+00 : f32
    %2 = vector.broadcast %cst : f32 to vector<8x32xf32>
    %cst_1 = arith.constant 0.000000e+00 : f32
    %3 = vector.broadcast %cst_1 : f32 to vector<8x32xf32>
    %c0_2 = arith.constant 0 : index
    %c0_3 = arith.constant 0 : index
    %4 = vector.load %arg1[%c0_2, %c0_3] : memref<64x32xf32, #tpu.memory_space<vmem>>, vector<64x32xf32>
    %c0_4 = arith.constant 0 : index
    %c0_5 = arith.constant 0 : index
    %5 = vector.load %arg2[%c0_4, %c0_5] : memref<32x128xf32, #tpu.memory_space<vmem>>, vector<32x128xf32>
    %cst_6 = arith.constant dense<0.000000e+00> : vector<64x128xf32>
    %6 = tpu.matmul %4, %5, %cst_6 {dimension_numbers = #tpu.dot_dimension_numbers<[1], [0], [0], [1], [0, 0, 1, 1], [], []>} : vector<64x32xf32>, vector<32x128xf32>, vector<64x128xf32> -> vector<64x128xf32>
    %7 = vector.broadcast %1 : vector<1x128xf32> to vector<64x128xf32>
    %8 = arith.addf %6, %7 : vector<64x128xf32>
    %c0_7 = arith.constant 0 : index
    %c0_8 = arith.constant 0 : index
    %9 = vector.load %arg11[%c0_7, %c0_8] : memref<64x128xf32, #tpu.memory_space<vmem>>, vector<64x128xf32>
    tpu.vector_store %arg11[%c0_7, %c0_8], %8 {strides = array<i32>} : memref<64x128xf32, #tpu.memory_space<vmem>>, vector<64x128xf32>,
    %c0_i32 = arith.constant 0 : i32
    %c8_i32 = arith.constant 8 : i32
    %10 = arith.muli %c0_i32, %c8_i32 : i32
    %11 = tpu.assume_multiple %10, 8 : i32
    %c0_i32_9 = arith.constant 0 : i32
    %12 = arith.addi %c0_i32_9, %c0_i32 : i32
    %13 = arith.index_cast %11 : i32 to index
    %c0_10 = arith.constant 0 : index
    %14 = vector.load %arg11[%13, %c0_10] : memref<64x128xf32, #tpu.memory_space<vmem>>, vector<8x128xf32>
    %c0_11 = arith.constant 0 : index
    %c0_12 = arith.constant 0 : index
    %15 = vector.load %arg3[%c0_11, %c0_12] : memref<32x128xf32, #tpu.memory_space<vmem>>, vector<32x128xf32>
    %cst_13 = arith.constant dense<0.000000e+00> : vector<8x128xf32>
    %16 = tpu.matmul %2, %15, %cst_13 {dimension_numbers = #tpu.dot_dimension_numbers<[1], [0], [0], [1], [0, 0, 1, 1], [], []>} : vector<8x32xf32>, vector<32x128xf32>, vector<8x128xf32> -> vector<8x128xf32>
    %17 = arith.addf %14, %16 : vector<8x128xf32>
    %18 = vector.extract_strided_slice %17 {offsets = [0, 0], sizes = [8, 96], strides = [1, 1]} : vector<8x128xf32> to vector<8x96xf32>
    %19 = arith.negf %18 : vector<8x96xf32>
    %20 = math.exp %19 : vector<8x96xf32>
    %cst_14 = arith.constant 1.000000e+00 : f32
    %21 = vector.broadcast %cst_14 : f32 to vector<8x96xf32>
    %22 = arith.addf %21, %20 : vector<8x96xf32>
    %23 = arith.divf %21, %22 : vector<8x96xf32>
    %24 = vector.extract_strided_slice %17 {offsets = [0, 96], sizes = [8, 32], strides = [1, 1]} : vector<8x128xf32> to vector<8x32xf32>
    %25 = math.tanh %24 : vector<8x32xf32>
    %26 = vector.extract_strided_slice %23 {offsets = [0, 0], sizes = [8, 32], strides = [1, 1]} : vector<8x96xf32> to vector<8x32xf32>
    %27 = vector.extract_strided_slice %23 {offsets = [0, 32], sizes = [8, 32], strides = [1, 1]} : vector<8x96xf32> to vector<8x32xf32>
    %28 = vector.extract_strided_slice %23 {offsets = [0, 64], sizes = [8, 32], strides = [1, 1]} : vector<8x96xf32> to vector<8x32xf32>
    %29 = arith.mulf %27, %3 : vector<8x32xf32>
    %30 = arith.mulf %26, %25 : vector<8x32xf32>
    %31 = arith.addf %29, %30 : vector<8x32xf32>
    %32 = math.tanh %31 : vector<8x32xf32>
    %33 = arith.mulf %28, %32 : vector<8x32xf32>
    %34 = arith.index_cast %12 : i32 to index
    %35 = memref.load %arg0[%34] : memref<8xi32, #tpu.memory_space<smem>>
    %36 = vector.broadcast %35 : i32 to vector<8x1xi32>
    %37 = arith.cmpi slt, %0, %36 : vector<8x1xi32>
    %38 = vector.shape_cast %37 : vector<8x1xi1> to vector<8x1xi1>
    %39 = vector.broadcast %38 : vector<8x1xi1> to vector<8x32xi1>
    %40 = arith.select %39, %33, %2 : vector<8x32xi1>, vector<8x32xf32>
    %41 = vector.shape_cast %37 : vector<8x1xi1> to vector<8x1xi1>
    %42 = vector.broadcast %41 : vector<8x1xi1> to vector<8x32xi1>
    %43 = arith.select %42, %31, %3 : vector<8x32xi1>, vector<8x32xf32>
    %c8_i32_15 = arith.constant 8 : i32
    %44 = arith.muli %c0_i32, %c8_i32_15 : i32
    %c0_i32_16 = arith.constant 0 : i32
    %45 = arith.addi %c0_i32_16, %44 : i32
    %46 = tpu.assume_multiple %45, 8 : i32
    %47 = arith.index_cast %46 : i32 to index
    %c0_17 = arith.constant 0 : index
    %48 = vector.load %arg12[%47, %c0_17] : memref<64x32xf32, #tpu.memory_space<vmem>>, vector<8x32xf32>
    tpu.vector_store %arg12[%47, %c0_17], %40 {strides = array<i32>} : memref<64x32xf32, #tpu.memory_space<vmem>>, vector<8x32xf32>,
    %c1_i32 = arith.constant 1 : i32
    %c8_i32_18 = arith.constant 8 : i32
    %49 = arith.muli %c1_i32, %c8_i32_18 : i32
    %50 = tpu.assume_multiple %49, 8 : i32
    %c0_i32_19 = arith.constant 0 : i32
    %51 = arith.addi %c0_i32_19, %c1_i32 : i32
    %52 = arith.index_cast %50 : i32 to index
    %c0_20 = arith.constant 0 : index
    %53 = vector.load %arg11[%52, %c0_20] : memref<64x128xf32, #tpu.memory_space<vmem>>, vector<8x128xf32>
    %c0_21 = arith.constant 0 : index
    %c0_22 = arith.constant 0 : index
    %54 = vector.load %arg3[%c0_21, %c0_22] : memref<32x128xf32, #tpu.memory_space<vmem>>, vector<32x128xf32>
    %cst_23 = arith.constant dense<0.000000e+00> : vector<8x128xf32>
    %55 = tpu.matmul %40, %54, %cst_23 {dimension_numbers = #tpu.dot_dimension_numbers<[1], [0], [0], [1], [0, 0, 1, 1], [], []>} : vector<8x32xf32>, vector<32x128xf32>, vector<8x128xf32> -> vector<8x128xf32>
    %56 = arith.addf %53, %55 : vector<8x128xf32>
    %57 = vector.extract_strided_slice %56 {offsets = [0, 0], sizes = [8, 96], strides = [1, 1]} : vector<8x128xf32> to vector<8x96xf32>
    %58 = arith.negf %57 : vector<8x96xf32>
    %59 = math.exp %58 : vector<8x96xf32>
    %cst_24 = arith.constant 1.000000e+00 : f32
    %60 = vector.broadcast %cst_24 : f32 to vector<8x96xf32>
    %61 = arith.addf %60, %59 : vector<8x96xf32>
    %62 = arith.divf %60, %61 : vector<8x96xf32>
    %63 = vector.extract_strided_slice %56 {offsets = [0, 96], sizes = [8, 32], strides = [1, 1]} : vector<8x128xf32> to vector<8x32xf32>
    %64 = math.tanh %63 : vector<8x32xf32>
    %65 = vector.extract_strided_slice %62 {offsets = [0, 0], sizes = [8, 32], strides = [1, 1]} : vector<8x96xf32> to vector<8x32xf32>
    %66 = vector.extract_strided_slice %62 {offsets = [0, 32], sizes = [8, 32], strides = [1, 1]} : vector<8x96xf32> to vector<8x32xf32>
    %67 = vector.extract_strided_slice %62 {offsets = [0, 64], sizes = [8, 32], strides = [1, 1]} : vector<8x96xf32> to vector<8x32xf32>
    %68 = arith.mulf %66, %43 : vector<8x32xf32>
    %69 = arith.mulf %65, %64 : vector<8x32xf32>
    %70 = arith.addf %68, %69 : vector<8x32xf32>
    %71 = math.tanh %70 : vector<8x32xf32>
    %72 = arith.mulf %67, %71 : vector<8x32xf32>
    %73 = arith.index_cast %51 : i32 to index
    %74 = memref.load %arg0[%73] : memref<8xi32, #tpu.memory_space<smem>>
    %75 = vector.broadcast %74 : i32 to vector<8x1xi32>
    %76 = arith.cmpi slt, %0, %75 : vector<8x1xi32>
    %77 = vector.shape_cast %76 : vector<8x1xi1> to vector<8x1xi1>
    %78 = vector.broadcast %77 : vector<8x1xi1> to vector<8x32xi1>
    %79 = arith.select %78, %72, %40 : vector<8x32xi1>, vector<8x32xf32>
    %80 = vector.shape_cast %76 : vector<8x1xi1> to vector<8x1xi1>
    %81 = vector.broadcast %80 : vector<8x1xi1> to vector<8x32xi1>
    %82 = arith.select %81, %70, %43 : vector<8x32xi1>, vector<8x32xf32>
    %c8_i32_25 = arith.constant 8 : i32
    %83 = arith.muli %c1_i32, %c8_i32_25 : i32
    %c0_i32_26 = arith.constant 0 : i32
    %84 = arith.addi %c0_i32_26, %83 : i32
    %85 = tpu.assume_multiple %84, 8 : i32
    %86 = arith.index_cast %85 : i32 to index
    %c0_27 = arith.constant 0 : index
    %87 = vector.load %arg12[%86, %c0_27] : memref<64x32xf32, #tpu.memory_space<vmem>>, vector<8x32xf32>
    tpu.vector_store %arg12[%86, %c0_27], %79 {strides = array<i32>} : memref<64x32xf32, #tpu.memory_space<vmem>>, vector<8x32xf32>,
    %c2_i32 = arith.constant 2 : i32
    %c8_i32_28 = arith.constant 8 : i32
    %88 = arith.muli %c2_i32, %c8_i32_28 : i32
    %89 = tpu.assume_multiple %88, 8 : i32
    %c0_i32_29 = arith.constant 0 : i32
    %90 = arith.addi %c0_i32_29, %c2_i32 : i32
    %91 = arith.index_cast %89 : i32 to index
    %c0_30 = arith.constant 0 : index
    %92 = vector.load %arg11[%91, %c0_30] : memref<64x128xf32, #tpu.memory_space<vmem>>, vector<8x128xf32>
    %c0_31 = arith.constant 0 : index
    %c0_32 = arith.constant 0 : index
    %93 = vector.load %arg3[%c0_31, %c0_32] : memref<32x128xf32, #tpu.memory_space<vmem>>, vector<32x128xf32>
    %cst_33 = arith.constant dense<0.000000e+00> : vector<8x128xf32>
    %94 = tpu.matmul %79, %93, %cst_33 {dimension_numbers = #tpu.dot_dimension_numbers<[1], [0], [0], [1], [0, 0, 1, 1], [], []>} : vector<8x32xf32>, vector<32x128xf32>, vector<8x128xf32> -> vector<8x128xf32>
    %95 = arith.addf %92, %94 : vector<8x128xf32>
    %96 = vector.extract_strided_slice %95 {offsets = [0, 0], sizes = [8, 96], strides = [1, 1]} : vector<8x128xf32> to vector<8x96xf32>
    %97 = arith.negf %96 : vector<8x96xf32>
    %98 = math.exp %97 : vector<8x96xf32>
    %cst_34 = arith.constant 1.000000e+00 : f32
    %99 = vector.broadcast %cst_34 : f32 to vector<8x96xf32>
    %100 = arith.addf %99, %98 : vector<8x96xf32>
    %101 = arith.divf %99, %100 : vector<8x96xf32>
    %102 = vector.extract_strided_slice %95 {offsets = [0, 96], sizes = [8, 32], strides = [1, 1]} : vector<8x128xf32> to vector<8x32xf32>
    %103 = math.tanh %102 : vector<8x32xf32>
    %104 = vector.extract_strided_slice %101 {offsets = [0, 0], sizes = [8, 32], strides = [1, 1]} : vector<8x96xf32> to vector<8x32xf32>
    %105 = vector.extract_strided_slice %101 {offsets = [0, 32], sizes = [8, 32], strides = [1, 1]} : vector<8x96xf32> to vector<8x32xf32>
    %106 = vector.extract_strided_slice %101 {offsets = [0, 64], sizes = [8, 32], strides = [1, 1]} : vector<8x96xf32> to vector<8x32xf32>
    %107 = arith.mulf %105, %82 : vector<8x32xf32>
    %108 = arith.mulf %104, %103 : vector<8x32xf32>
    %109 = arith.addf %107, %108 : vector<8x32xf32>
    %110 = math.tanh %109 : vector<8x32xf32>
    %111 = arith.mulf %106, %110 : vector<8x32xf32>
    %112 = arith.index_cast %90 : i32 to index
    %113 = memref.load %arg0[%112] : memref<8xi32, #tpu.memory_space<smem>>
    %114 = vector.broadcast %113 : i32 to vector<8x1xi32>
    %115 = arith.cmpi slt, %0, %114 : vector<8x1xi32>
    %116 = vector.shape_cast %115 : vector<8x1xi1> to vector<8x1xi1>
    %117 = vector.broadcast %116 : vector<8x1xi1> to vector<8x32xi1>
    %118 = arith.select %117, %111, %79 : vector<8x32xi1>, vector<8x32xf32>
    %119 = vector.shape_cast %115 : vector<8x1xi1> to vector<8x1xi1>
    %120 = vector.broadcast %119 : vector<8x1xi1> to vector<8x32xi1>
    %121 = arith.select %120, %109, %82 : vector<8x32xi1>, vector<8x32xf32>
    %c8_i32_35 = arith.constant 8 : i32
    %122 = arith.muli %c2_i32, %c8_i32_35 : i32
    %c0_i32_36 = arith.constant 0 : i32
    %123 = arith.addi %c0_i32_36, %122 : i32
    %124 = tpu.assume_multiple %123, 8 : i32
    %125 = arith.index_cast %124 : i32 to index
    %c0_37 = arith.constant 0 : index
    %126 = vector.load %arg12[%125, %c0_37] : memref<64x32xf32, #tpu.memory_space<vmem>>, vector<8x32xf32>
    tpu.vector_store %arg12[%125, %c0_37], %118 {strides = array<i32>} : memref<64x32xf32, #tpu.memory_space<vmem>>, vector<8x32xf32>,
    %c3_i32 = arith.constant 3 : i32
    %c8_i32_38 = arith.constant 8 : i32
    %127 = arith.muli %c3_i32, %c8_i32_38 : i32
    %128 = tpu.assume_multiple %127, 8 : i32
    %c0_i32_39 = arith.constant 0 : i32
    %129 = arith.addi %c0_i32_39, %c3_i32 : i32
    %130 = arith.index_cast %128 : i32 to index
    %c0_40 = arith.constant 0 : index
    %131 = vector.load %arg11[%130, %c0_40] : memref<64x128xf32, #tpu.memory_space<vmem>>, vector<8x128xf32>
    %c0_41 = arith.constant 0 : index
    %c0_42 = arith.constant 0 : index
    %132 = vector.load %arg3[%c0_41, %c0_42] : memref<32x128xf32, #tpu.memory_space<vmem>>, vector<32x128xf32>
    %cst_43 = arith.constant dense<0.000000e+00> : vector<8x128xf32>
    %133 = tpu.matmul %118, %132, %cst_43 {dimension_numbers = #tpu.dot_dimension_numbers<[1], [0], [0], [1], [0, 0, 1, 1], [], []>} : vector<8x32xf32>, vector<32x128xf32>, vector<8x128xf32> -> vector<8x128xf32>
    %134 = arith.addf %131, %133 : vector<8x128xf32>
    %135 = vector.extract_strided_slice %134 {offsets = [0, 0], sizes = [8, 96], strides = [1, 1]} : vector<8x128xf32> to vector<8x96xf32>
    %136 = arith.negf %135 : vector<8x96xf32>
    %137 = math.exp %136 : vector<8x96xf32>
    %cst_44 = arith.constant 1.000000e+00 : f32
    %138 = vector.broadcast %cst_44 : f32 to vector<8x96xf32>
    %139 = arith.addf %138, %137 : vector<8x96xf32>
    %140 = arith.divf %138, %139 : vector<8x96xf32>
    %141 = vector.extract_strided_slice %134 {offsets = [0, 96], sizes = [8, 32], strides = [1, 1]} : vector<8x128xf32> to vector<8x32xf32>
    %142 = math.tanh %141 : vector<8x32xf32>
    %143 = vector.extract_strided_slice %140 {offsets = [0, 0], sizes = [8, 32], strides = [1, 1]} : vector<8x96xf32> to vector<8x32xf32>
    %144 = vector.extract_strided_slice %140 {offsets = [0, 32], sizes = [8, 32], strides = [1, 1]} : vector<8x96xf32> to vector<8x32xf32>
    %145 = vector.extract_strided_slice %140 {offsets = [0, 64], sizes = [8, 32], strides = [1, 1]} : vector<8x96xf32> to vector<8x32xf32>
    %146 = arith.mulf %144, %121 : vector<8x32xf32>
    %147 = arith.mulf %143, %142 : vector<8x32xf32>
    %148 = arith.addf %146, %147 : vector<8x32xf32>
    %149 = math.tanh %148 : vector<8x32xf32>
    %150 = arith.mulf %145, %149 : vector<8x32xf32>
    %151 = arith.index_cast %129 : i32 to index
    %152 = memref.load %arg0[%151] : memref<8xi32, #tpu.memory_space<smem>>
    %153 = vector.broadcast %152 : i32 to vector<8x1xi32>
    %154 = arith.cmpi slt, %0, %153 : vector<8x1xi32>
    %155 = vector.shape_cast %154 : vector<8x1xi1> to vector<8x1xi1>
    %156 = vector.broadcast %155 : vector<8x1xi1> to vector<8x32xi1>
    %157 = arith.select %156, %150, %118 : vector<8x32xi1>, vector<8x32xf32>
    %158 = vector.shape_cast %154 : vector<8x1xi1> to vector<8x1xi1>
    %159 = vector.broadcast %158 : vector<8x1xi1> to vector<8x32xi1>
    %160 = arith.select %159, %148, %121 : vector<8x32xi1>, vector<8x32xf32>
    %c8_i32_45 = arith.constant 8 : i32
    %161 = arith.muli %c3_i32, %c8_i32_45 : i32
    %c0_i32_46 = arith.constant 0 : i32
    %162 = arith.addi %c0_i32_46, %161 : i32
    %163 = tpu.assume_multiple %162, 8 : i32
    %164 = arith.index_cast %163 : i32 to index
    %c0_47 = arith.constant 0 : index
    %165 = vector.load %arg12[%164, %c0_47] : memref<64x32xf32, #tpu.memory_space<vmem>>, vector<8x32xf32>
    tpu.vector_store %arg12[%164, %c0_47], %157 {strides = array<i32>} : memref<64x32xf32, #tpu.memory_space<vmem>>, vector<8x32xf32>,
    %c4_i32 = arith.constant 4 : i32
    %c8_i32_48 = arith.constant 8 : i32
    %166 = arith.muli %c4_i32, %c8_i32_48 : i32
    %167 = tpu.assume_multiple %166, 8 : i32
    %c0_i32_49 = arith.constant 0 : i32
    %168 = arith.addi %c0_i32_49, %c4_i32 : i32
    %169 = arith.index_cast %167 : i32 to index
    %c0_50 = arith.constant 0 : index
    %170 = vector.load %arg11[%169, %c0_50] : memref<64x128xf32, #tpu.memory_space<vmem>>, vector<8x128xf32>
    %c0_51 = arith.constant 0 : index
    %c0_52 = arith.constant 0 : index
    %171 = vector.load %arg3[%c0_51, %c0_52] : memref<32x128xf32, #tpu.memory_space<vmem>>, vector<32x128xf32>
    %cst_53 = arith.constant dense<0.000000e+00> : vector<8x128xf32>
    %172 = tpu.matmul %157, %171, %cst_53 {dimension_numbers = #tpu.dot_dimension_numbers<[1], [0], [0], [1], [0, 0, 1, 1], [], []>} : vector<8x32xf32>, vector<32x128xf32>, vector<8x128xf32> -> vector<8x128xf32>
    %173 = arith.addf %170, %172 : vector<8x128xf32>
    %174 = vector.extract_strided_slice %173 {offsets = [0, 0], sizes = [8, 96], strides = [1, 1]} : vector<8x128xf32> to vector<8x96xf32>
    %175 = arith.negf %174 : vector<8x96xf32>
    %176 = math.exp %175 : vector<8x96xf32>
    %cst_54 = arith.constant 1.000000e+00 : f32
    %177 = vector.broadcast %cst_54 : f32 to vector<8x96xf32>
    %178 = arith.addf %177, %176 : vector<8x96xf32>
    %179 = arith.divf %177, %178 : vector<8x96xf32>
    %180 = vector.extract_strided_slice %173 {offsets = [0, 96], sizes = [8, 32], strides = [1, 1]} : vector<8x128xf32> to vector<8x32xf32>
    %181 = math.tanh %180 : vector<8x32xf32>
    %182 = vector.extract_strided_slice %179 {offsets = [0, 0], sizes = [8, 32], strides = [1, 1]} : vector<8x96xf32> to vector<8x32xf32>
    %183 = vector.extract_strided_slice %179 {offsets = [0, 32], sizes = [8, 32], strides = [1, 1]} : vector<8x96xf32> to vector<8x32xf32>
    %184 = vector.extract_strided_slice %179 {offsets = [0, 64], sizes = [8, 32], strides = [1, 1]} : vector<8x96xf32> to vector<8x32xf32>
    %185 = arith.mulf %183, %160 : vector<8x32xf32>
    %186 = arith.mulf %182, %181 : vector<8x32xf32>
    %187 = arith.addf %185, %186 : vector<8x32xf32>
    %188 = math.tanh %187 : vector<8x32xf32>
    %189 = arith.mulf %184, %188 : vector<8x32xf32>
    %190 = arith.index_cast %168 : i32 to index
    %191 = memref.load %arg0[%190] : memref<8xi32, #tpu.memory_space<smem>>
    %192 = vector.broadcast %191 : i32 to vector<8x1xi32>
    %193 = arith.cmpi slt, %0, %192 : vector<8x1xi32>
    %194 = vector.shape_cast %193 : vector<8x1xi1> to vector<8x1xi1>
    %195 = vector.broadcast %194 : vector<8x1xi1> to vector<8x32xi1>
    %196 = arith.select %195, %189, %157 : vector<8x32xi1>, vector<8x32xf32>
    %197 = vector.shape_cast %193 : vector<8x1xi1> to vector<8x1xi1>
    %198 = vector.broadcast %197 : vector<8x1xi1> to vector<8x32xi1>
    %199 = arith.select %198, %187, %160 : vector<8x32xi1>, vector<8x32xf32>
    %c8_i32_55 = arith.constant 8 : i32
    %200 = arith.muli %c4_i32, %c8_i32_55 : i32
    %c0_i32_56 = arith.constant 0 : i32
    %201 = arith.addi %c0_i32_56, %200 : i32
    %202 = tpu.assume_multiple %201, 8 : i32
    %203 = arith.index_cast %202 : i32 to index
    %c0_57 = arith.constant 0 : index
    %204 = vector.load %arg12[%203, %c0_57] : memref<64x32xf32, #tpu.memory_space<vmem>>, vector<8x32xf32>
    tpu.vector_store %arg12[%203, %c0_57], %196 {strides = array<i32>} : memref<64x32xf32, #tpu.memory_space<vmem>>, vector<8x32xf32>,
    %c5_i32 = arith.constant 5 : i32
    %c8_i32_58 = arith.constant 8 : i32
    %205 = arith.muli %c5_i32, %c8_i32_58 : i32
    %206 = tpu.assume_multiple %205, 8 : i32
    %c0_i32_59 = arith.constant 0 : i32
    %207 = arith.addi %c0_i32_59, %c5_i32 : i32
    %208 = arith.index_cast %206 : i32 to index
    %c0_60 = arith.constant 0 : index
    %209 = vector.load %arg11[%208, %c0_60] : memref<64x128xf32, #tpu.memory_space<vmem>>, vector<8x128xf32>
    %c0_61 = arith.constant 0 : index
    %c0_62 = arith.constant 0 : index
    %210 = vector.load %arg3[%c0_61, %c0_62] : memref<32x128xf32, #tpu.memory_space<vmem>>, vector<32x128xf32>
    %cst_63 = arith.constant dense<0.000000e+00> : vector<8x128xf32>
    %211 = tpu.matmul %196, %210, %cst_63 {dimension_numbers = #tpu.dot_dimension_numbers<[1], [0], [0], [1], [0, 0, 1, 1], [], []>} : vector<8x32xf32>, vector<32x128xf32>, vector<8x128xf32> -> vector<8x128xf32>
    %212 = arith.addf %209, %211 : vector<8x128xf32>
    %213 = vector.extract_strided_slice %212 {offsets = [0, 0], sizes = [8, 96], strides = [1, 1]} : vector<8x128xf32> to vector<8x96xf32>
    %214 = arith.negf %213 : vector<8x96xf32>
    %215 = math.exp %214 : vector<8x96xf32>
    %cst_64 = arith.constant 1.000000e+00 : f32
    %216 = vector.broadcast %cst_64 : f32 to vector<8x96xf32>
    %217 = arith.addf %216, %215 : vector<8x96xf32>
    %218 = arith.divf %216, %217 : vector<8x96xf32>
    %219 = vector.extract_strided_slice %212 {offsets = [0, 96], sizes = [8, 32], strides = [1, 1]} : vector<8x128xf32> to vector<8x32xf32>
    %220 = math.tanh %219 : vector<8x32xf32>
    %221 = vector.extract_strided_slice %218 {offsets = [0, 0], sizes = [8, 32], strides = [1, 1]} : vector<8x96xf32> to vector<8x32xf32>
    %222 = vector.extract_strided_slice %218 {offsets = [0, 32], sizes = [8, 32], strides = [1, 1]} : vector<8x96xf32> to vector<8x32xf32>
    %223 = vector.extract_strided_slice %218 {offsets = [0, 64], sizes = [8, 32], strides = [1, 1]} : vector<8x96xf32> to vector<8x32xf32>
    %224 = arith.mulf %222, %199 : vector<8x32xf32>
    %225 = arith.mulf %221, %220 : vector<8x32xf32>
    %226 = arith.addf %224, %225 : vector<8x32xf32>
    %227 = math.tanh %226 : vector<8x32xf32>
    %228 = arith.mulf %223, %227 : vector<8x32xf32>
    %229 = arith.index_cast %207 : i32 to index
    %230 = memref.load %arg0[%229] : memref<8xi32, #tpu.memory_space<smem>>
    %231 = vector.broadcast %230 : i32 to vector<8x1xi32>
    %232 = arith.cmpi slt, %0, %231 : vector<8x1xi32>
    %233 = vector.shape_cast %232 : vector<8x1xi1> to vector<8x1xi1>
    %234 = vector.broadcast %233 : vector<8x1xi1> to vector<8x32xi1>
    %235 = arith.select %234, %228, %196 : vector<8x32xi1>, vector<8x32xf32>
    %236 = vector.shape_cast %232 : vector<8x1xi1> to vector<8x1xi1>
    %237 = vector.broadcast %236 : vector<8x1xi1> to vector<8x32xi1>
    %238 = arith.select %237, %226, %199 : vector<8x32xi1>, vector<8x32xf32>
    %c8_i32_65 = arith.constant 8 : i32
    %239 = arith.muli %c5_i32, %c8_i32_65 : i32
    %c0_i32_66 = arith.constant 0 : i32
    %240 = arith.addi %c0_i32_66, %239 : i32
    %241 = tpu.assume_multiple %240, 8 : i32
    %242 = arith.index_cast %241 : i32 to index
    %c0_67 = arith.constant 0 : index
    %243 = vector.load %arg12[%242, %c0_67] : memref<64x32xf32, #tpu.memory_space<vmem>>, vector<8x32xf32>
    tpu.vector_store %arg12[%242, %c0_67], %235 {strides = array<i32>} : memref<64x32xf32, #tpu.memory_space<vmem>>, vector<8x32xf32>,
    %c6_i32 = arith.constant 6 : i32
    %c8_i32_68 = arith.constant 8 : i32
    %244 = arith.muli %c6_i32, %c8_i32_68 : i32
    %245 = tpu.assume_multiple %244, 8 : i32
    %c0_i32_69 = arith.constant 0 : i32
    %246 = arith.addi %c0_i32_69, %c6_i32 : i32
    %247 = arith.index_cast %245 : i32 to index
    %c0_70 = arith.constant 0 : index
    %248 = vector.load %arg11[%247, %c0_70] : memref<64x128xf32, #tpu.memory_space<vmem>>, vector<8x128xf32>
    %c0_71 = arith.constant 0 : index
    %c0_72 = arith.constant 0 : index
    %249 = vector.load %arg3[%c0_71, %c0_72] : memref<32x128xf32, #tpu.memory_space<vmem>>, vector<32x128xf32>
    %cst_73 = arith.constant dense<0.000000e+00> : vector<8x128xf32>
    %250 = tpu.matmul %235, %249, %cst_73 {dimension_numbers = #tpu.dot_dimension_numbers<[1], [0], [0], [1], [0, 0, 1, 1], [], []>} : vector<8x32xf32>, vector<32x128xf32>, vector<8x128xf32> -> vector<8x128xf32>
    %251 = arith.addf %248, %250 : vector<8x128xf32>
    %252 = vector.extract_strided_slice %251 {offsets = [0, 0], sizes = [8, 96], strides = [1, 1]} : vector<8x128xf32> to vector<8x96xf32>
    %253 = arith.negf %252 : vector<8x96xf32>
    %254 = math.exp %253 : vector<8x96xf32>
    %cst_74 = arith.constant 1.000000e+00 : f32
    %255 = vector.broadcast %cst_74 : f32 to vector<8x96xf32>
    %256 = arith.addf %255, %254 : vector<8x96xf32>
    %257 = arith.divf %255, %256 : vector<8x96xf32>
    %258 = vector.extract_strided_slice %251 {offsets = [0, 96], sizes = [8, 32], strides = [1, 1]} : vector<8x128xf32> to vector<8x32xf32>
    %259 = math.tanh %258 : vector<8x32xf32>
    %260 = vector.extract_strided_slice %257 {offsets = [0, 0], sizes = [8, 32], strides = [1, 1]} : vector<8x96xf32> to vector<8x32xf32>
    %261 = vector.extract_strided_slice %257 {offsets = [0, 32], sizes = [8, 32], strides = [1, 1]} : vector<8x96xf32> to vector<8x32xf32>
    %262 = vector.extract_strided_slice %257 {offsets = [0, 64], sizes = [8, 32], strides = [1, 1]} : vector<8x96xf32> to vector<8x32xf32>
    %263 = arith.mulf %261, %238 : vector<8x32xf32>
    %264 = arith.mulf %260, %259 : vector<8x32xf32>
    %265 = arith.addf %263, %264 : vector<8x32xf32>
    %266 = math.tanh %265 : vector<8x32xf32>
    %267 = arith.mulf %262, %266 : vector<8x32xf32>
    %268 = arith.index_cast %246 : i32 to index
    %269 = memref.load %arg0[%268] : memref<8xi32, #tpu.memory_space<smem>>
    %270 = vector.broadcast %269 : i32 to vector<8x1xi32>
    %271 = arith.cmpi slt, %0, %270 : vector<8x1xi32>
    %272 = vector.shape_cast %271 : vector<8x1xi1> to vector<8x1xi1>
    %273 = vector.broadcast %272 : vector<8x1xi1> to vector<8x32xi1>
    %274 = arith.select %273, %267, %235 : vector<8x32xi1>, vector<8x32xf32>
    %275 = vector.shape_cast %271 : vector<8x1xi1> to vector<8x1xi1>
    %276 = vector.broadcast %275 : vector<8x1xi1> to vector<8x32xi1>
    %277 = arith.select %276, %265, %238 : vector<8x32xi1>, vector<8x32xf32>
    %c8_i32_75 = arith.constant 8 : i32
    %278 = arith.muli %c6_i32, %c8_i32_75 : i32
    %c0_i32_76 = arith.constant 0 : i32
    %279 = arith.addi %c0_i32_76, %278 : i32
    %280 = tpu.assume_multiple %279, 8 : i32
    %281 = arith.index_cast %280 : i32 to index
    %c0_77 = arith.constant 0 : index
    %282 = vector.load %arg12[%281, %c0_77] : memref<64x32xf32, #tpu.memory_space<vmem>>, vector<8x32xf32>
    tpu.vector_store %arg12[%281, %c0_77], %274 {strides = array<i32>} : memref<64x32xf32, #tpu.memory_space<vmem>>, vector<8x32xf32>,
    %c7_i32 = arith.constant 7 : i32
    %c8_i32_78 = arith.constant 8 : i32
    %283 = arith.muli %c7_i32, %c8_i32_78 : i32
    %284 = tpu.assume_multiple %283, 8 : i32
    %c0_i32_79 = arith.constant 0 : i32
    %285 = arith.addi %c0_i32_79, %c7_i32 : i32
    %286 = arith.index_cast %284 : i32 to index
    %c0_80 = arith.constant 0 : index
    %287 = vector.load %arg11[%286, %c0_80] : memref<64x128xf32, #tpu.memory_space<vmem>>, vector<8x128xf32>
    %c0_81 = arith.constant 0 : index
    %c0_82 = arith.constant 0 : index
    %288 = vector.load %arg3[%c0_81, %c0_82] : memref<32x128xf32, #tpu.memory_space<vmem>>, vector<32x128xf32>
    %cst_83 = arith.constant dense<0.000000e+00> : vector<8x128xf32>
    %289 = tpu.matmul %274, %288, %cst_83 {dimension_numbers = #tpu.dot_dimension_numbers<[1], [0], [0], [1], [0, 0, 1, 1], [], []>} : vector<8x32xf32>, vector<32x128xf32>, vector<8x128xf32> -> vector<8x128xf32>
    %290 = arith.addf %287, %289 : vector<8x128xf32>
    %291 = vector.extract_strided_slice %290 {offsets = [0, 0], sizes = [8, 96], strides = [1, 1]} : vector<8x128xf32> to vector<8x96xf32>
    %292 = arith.negf %291 : vector<8x96xf32>
    %293 = math.exp %292 : vector<8x96xf32>
    %cst_84 = arith.constant 1.000000e+00 : f32
    %294 = vector.broadcast %cst_84 : f32 to vector<8x96xf32>
    %295 = arith.addf %294, %293 : vector<8x96xf32>
    %296 = arith.divf %294, %295 : vector<8x96xf32>
    %297 = vector.extract_strided_slice %290 {offsets = [0, 96], sizes = [8, 32], strides = [1, 1]} : vector<8x128xf32> to vector<8x32xf32>
    %298 = math.tanh %297 : vector<8x32xf32>
    %299 = vector.extract_strided_slice %296 {offsets = [0, 0], sizes = [8, 32], strides = [1, 1]} : vector<8x96xf32> to vector<8x32xf32>
    %300 = vector.extract_strided_slice %296 {offsets = [0, 32], sizes = [8, 32], strides = [1, 1]} : vector<8x96xf32> to vector<8x32xf32>
    %301 = vector.extract_strided_slice %296 {offsets = [0, 64], sizes = [8, 32], strides = [1, 1]} : vector<8x96xf32> to vector<8x32xf32>
    %302 = arith.mulf %300, %277 : vector<8x32xf32>
    %303 = arith.mulf %299, %298 : vector<8x32xf32>
    %304 = arith.addf %302, %303 : vector<8x32xf32>
    %305 = math.tanh %304 : vector<8x32xf32>
    %306 = arith.mulf %301, %305 : vector<8x32xf32>
    %307 = arith.index_cast %285 : i32 to index
    %308 = memref.load %arg0[%307] : memref<8xi32, #tpu.memory_space<smem>>
    %309 = vector.broadcast %308 : i32 to vector<8x1xi32>
    %310 = arith.cmpi slt, %0, %309 : vector<8x1xi32>
    %311 = vector.shape_cast %310 : vector<8x1xi1> to vector<8x1xi1>
    %312 = vector.broadcast %311 : vector<8x1xi1> to vector<8x32xi1>
    %313 = arith.select %312, %306, %274 : vector<8x32xi1>, vector<8x32xf32>
    %314 = vector.shape_cast %310 : vector<8x1xi1> to vector<8x1xi1>
    %315 = vector.broadcast %314 : vector<8x1xi1> to vector<8x32xi1>
    %316 = arith.select %315, %304, %277 : vector<8x32xi1>, vector<8x32xf32>
    %c8_i32_85 = arith.constant 8 : i32
    %317 = arith.muli %c7_i32, %c8_i32_85 : i32
    %c0_i32_86 = arith.constant 0 : i32
    %318 = arith.addi %c0_i32_86, %317 : i32
    %319 = tpu.assume_multiple %318, 8 : i32
    %320 = arith.index_cast %319 : i32 to index
    %c0_87 = arith.constant 0 : index
    %321 = vector.load %arg12[%320, %c0_87] : memref<64x32xf32, #tpu.memory_space<vmem>>, vector<8x32xf32>
    tpu.vector_store %arg12[%320, %c0_87], %313 {strides = array<i32>} : memref<64x32xf32, #tpu.memory_space<vmem>>, vector<8x32xf32>,
    %c8_i32_88 = arith.constant 8 : i32
    %c0_89 = arith.constant 0 : index
    %c0_90 = arith.constant 0 : index
    %322 = vector.load %arg7[%c0_89, %c0_90] : memref<1x128xf32, #tpu.memory_space<vmem>>, vector<1x128xf32>
    %cst_91 = arith.constant 0.000000e+00 : f32
    %323 = vector.broadcast %cst_91 : f32 to vector<8x32xf32>
    %cst_92 = arith.constant 0.000000e+00 : f32
    %324 = vector.broadcast %cst_92 : f32 to vector<8x32xf32>
    %c0_93 = arith.constant 0 : index
    %c0_94 = arith.constant 0 : index
    %325 = vector.load %arg12[%c0_93, %c0_94] : memref<64x32xf32, #tpu.memory_space<vmem>>, vector<64x32xf32>
    %c0_95 = arith.constant 0 : index
    %c0_96 = arith.constant 0 : index
    %326 = vector.load %arg5[%c0_95, %c0_96] : memref<32x128xf32, #tpu.memory_space<vmem>>, vector<32x128xf32>
    %cst_97 = arith.constant dense<0.000000e+00> : vector<64x128xf32>
    %327 = tpu.matmul %325, %326, %cst_97 {dimension_numbers = #tpu.dot_dimension_numbers<[1], [0], [0], [1], [0, 0, 1, 1], [], []>} : vector<64x32xf32>, vector<32x128xf32>, vector<64x128xf32> -> vector<64x128xf32>
    %328 = vector.broadcast %322 : vector<1x128xf32> to vector<64x128xf32>
    %329 = arith.addf %327, %328 : vector<64x128xf32>
    %c0_98 = arith.constant 0 : index
    %c0_99 = arith.constant 0 : index
    %330 = vector.load %arg11[%c0_98, %c0_99] : memref<64x128xf32, #tpu.memory_space<vmem>>, vector<64x128xf32>
    tpu.vector_store %arg11[%c0_98, %c0_99], %329 {strides = array<i32>} : memref<64x128xf32, #tpu.memory_space<vmem>>, vector<64x128xf32>,
    %c0_i32_100 = arith.constant 0 : i32
    %c8_i32_101 = arith.constant 8 : i32
    %331 = arith.muli %c0_i32_100, %c8_i32_101 : i32
    %332 = tpu.assume_multiple %331, 8 : i32
    %c0_i32_102 = arith.constant 0 : i32
    %333 = arith.addi %c0_i32_102, %c0_i32_100 : i32
    %334 = arith.index_cast %332 : i32 to index
    %c0_103 = arith.constant 0 : index
    %335 = vector.load %arg11[%334, %c0_103] : memref<64x128xf32, #tpu.memory_space<vmem>>, vector<8x128xf32>
    %c0_104 = arith.constant 0 : index
    %c0_105 = arith.constant 0 : index
    %336 = vector.load %arg6[%c0_104, %c0_105] : memref<32x128xf32, #tpu.memory_space<vmem>>, vector<32x128xf32>
    %cst_106 = arith.constant dense<0.000000e+00> : vector<8x128xf32>
    %337 = tpu.matmul %323, %336, %cst_106 {dimension_numbers = #tpu.dot_dimension_numbers<[1], [0], [0], [1], [0, 0, 1, 1], [], []>} : vector<8x32xf32>, vector<32x128xf32>, vector<8x128xf32> -> vector<8x128xf32>
    %338 = arith.addf %335, %337 : vector<8x128xf32>
    %339 = vector.extract_strided_slice %338 {offsets = [0, 0], sizes = [8, 96], strides = [1, 1]} : vector<8x128xf32> to vector<8x96xf32>
    %340 = arith.negf %339 : vector<8x96xf32>
    %341 = math.exp %340 : vector<8x96xf32>
    %cst_107 = arith.constant 1.000000e+00 : f32
    %342 = vector.broadcast %cst_107 : f32 to vector<8x96xf32>
    %343 = arith.addf %342, %341 : vector<8x96xf32>
    %344 = arith.divf %342, %343 : vector<8x96xf32>
    %345 = vector.extract_strided_slice %338 {offsets = [0, 96], sizes = [8, 32], strides = [1, 1]} : vector<8x128xf32> to vector<8x32xf32>
    %346 = math.tanh %345 : vector<8x32xf32>
    %347 = vector.extract_strided_slice %344 {offsets = [0, 0], sizes = [8, 32], strides = [1, 1]} : vector<8x96xf32> to vector<8x32xf32>
    %348 = vector.extract_strided_slice %344 {offsets = [0, 32], sizes = [8, 32], strides = [1, 1]} : vector<8x96xf32> to vector<8x32xf32>
    %349 = vector.extract_strided_slice %344 {offsets = [0, 64], sizes = [8, 32], strides = [1, 1]} : vector<8x96xf32> to vector<8x32xf32>
    %350 = arith.mulf %348, %324 : vector<8x32xf32>
    %351 = arith.mulf %347, %346 : vector<8x32xf32>
    %352 = arith.addf %350, %351 : vector<8x32xf32>
    %353 = math.tanh %352 : vector<8x32xf32>
    %354 = arith.mulf %349, %353 : vector<8x32xf32>
    %355 = arith.index_cast %333 : i32 to index
    %356 = memref.load %arg0[%355] : memref<8xi32, #tpu.memory_space<smem>>
    %357 = vector.broadcast %356 : i32 to vector<8x1xi32>
    %358 = arith.cmpi slt, %0, %357 : vector<8x1xi32>
    %359 = vector.shape_cast %358 : vector<8x1xi1> to vector<8x1xi1>
    %360 = vector.broadcast %359 : vector<8x1xi1> to vector<8x32xi1>
    %361 = arith.select %360, %354, %323 : vector<8x32xi1>, vector<8x32xf32>
    %362 = vector.shape_cast %358 : vector<8x1xi1> to vector<8x1xi1>
    %363 = vector.broadcast %362 : vector<8x1xi1> to vector<8x32xi1>
    %364 = arith.select %363, %352, %324 : vector<8x32xi1>, vector<8x32xf32>
    %c1_i32_108 = arith.constant 1 : i32
    %c8_i32_109 = arith.constant 8 : i32
    %365 = arith.muli %c1_i32_108, %c8_i32_109 : i32
    %366 = tpu.assume_multiple %365, 8 : i32
    %c0_i32_110 = arith.constant 0 : i32
    %367 = arith.addi %c0_i32_110, %c1_i32_108 : i32
    %368 = arith.index_cast %366 : i32 to index
    %c0_111 = arith.constant 0 : index
    %369 = vector.load %arg11[%368, %c0_111] : memref<64x128xf32, #tpu.memory_space<vmem>>, vector<8x128xf32>
    %c0_112 = arith.constant 0 : index
    %c0_113 = arith.constant 0 : index
    %370 = vector.load %arg6[%c0_112, %c0_113] : memref<32x128xf32, #tpu.memory_space<vmem>>, vector<32x128xf32>
    %cst_114 = arith.constant dense<0.000000e+00> : vector<8x128xf32>
    %371 = tpu.matmul %361, %370, %cst_114 {dimension_numbers = #tpu.dot_dimension_numbers<[1], [0], [0], [1], [0, 0, 1, 1], [], []>} : vector<8x32xf32>, vector<32x128xf32>, vector<8x128xf32> -> vector<8x128xf32>
    %372 = arith.addf %369, %371 : vector<8x128xf32>
    %373 = vector.extract_strided_slice %372 {offsets = [0, 0], sizes = [8, 96], strides = [1, 1]} : vector<8x128xf32> to vector<8x96xf32>
    %374 = arith.negf %373 : vector<8x96xf32>
    %375 = math.exp %374 : vector<8x96xf32>
    %cst_115 = arith.constant 1.000000e+00 : f32
    %376 = vector.broadcast %cst_115 : f32 to vector<8x96xf32>
    %377 = arith.addf %376, %375 : vector<8x96xf32>
    %378 = arith.divf %376, %377 : vector<8x96xf32>
    %379 = vector.extract_strided_slice %372 {offsets = [0, 96], sizes = [8, 32], strides = [1, 1]} : vector<8x128xf32> to vector<8x32xf32>
    %380 = math.tanh %379 : vector<8x32xf32>
    %381 = vector.extract_strided_slice %378 {offsets = [0, 0], sizes = [8, 32], strides = [1, 1]} : vector<8x96xf32> to vector<8x32xf32>
    %382 = vector.extract_strided_slice %378 {offsets = [0, 32], sizes = [8, 32], strides = [1, 1]} : vector<8x96xf32> to vector<8x32xf32>
    %383 = vector.extract_strided_slice %378 {offsets = [0, 64], sizes = [8, 32], strides = [1, 1]} : vector<8x96xf32> to vector<8x32xf32>
    %384 = arith.mulf %382, %364 : vector<8x32xf32>
    %385 = arith.mulf %381, %380 : vector<8x32xf32>
    %386 = arith.addf %384, %385 : vector<8x32xf32>
    %387 = math.tanh %386 : vector<8x32xf32>
    %388 = arith.mulf %383, %387 : vector<8x32xf32>
    %389 = arith.index_cast %367 : i32 to index
    %390 = memref.load %arg0[%389] : memref<8xi32, #tpu.memory_space<smem>>
    %391 = vector.broadcast %390 : i32 to vector<8x1xi32>
    %392 = arith.cmpi slt, %0, %391 : vector<8x1xi32>
    %393 = vector.shape_cast %392 : vector<8x1xi1> to vector<8x1xi1>
    %394 = vector.broadcast %393 : vector<8x1xi1> to vector<8x32xi1>
    %395 = arith.select %394, %388, %361 : vector<8x32xi1>, vector<8x32xf32>
    %396 = vector.shape_cast %392 : vector<8x1xi1> to vector<8x1xi1>
    %397 = vector.broadcast %396 : vector<8x1xi1> to vector<8x32xi1>
    %398 = arith.select %397, %386, %364 : vector<8x32xi1>, vector<8x32xf32>
    %c2_i32_116 = arith.constant 2 : i32
    %c8_i32_117 = arith.constant 8 : i32
    %399 = arith.muli %c2_i32_116, %c8_i32_117 : i32
    %400 = tpu.assume_multiple %399, 8 : i32
    %c0_i32_118 = arith.constant 0 : i32
    %401 = arith.addi %c0_i32_118, %c2_i32_116 : i32
    %402 = arith.index_cast %400 : i32 to index
    %c0_119 = arith.constant 0 : index
    %403 = vector.load %arg11[%402, %c0_119] : memref<64x128xf32, #tpu.memory_space<vmem>>, vector<8x128xf32>
    %c0_120 = arith.constant 0 : index
    %c0_121 = arith.constant 0 : index
    %404 = vector.load %arg6[%c0_120, %c0_121] : memref<32x128xf32, #tpu.memory_space<vmem>>, vector<32x128xf32>
    %cst_122 = arith.constant dense<0.000000e+00> : vector<8x128xf32>
    %405 = tpu.matmul %395, %404, %cst_122 {dimension_numbers = #tpu.dot_dimension_numbers<[1], [0], [0], [1], [0, 0, 1, 1], [], []>} : vector<8x32xf32>, vector<32x128xf32>, vector<8x128xf32> -> vector<8x128xf32>
    %406 = arith.addf %403, %405 : vector<8x128xf32>
    %407 = vector.extract_strided_slice %406 {offsets = [0, 0], sizes = [8, 96], strides = [1, 1]} : vector<8x128xf32> to vector<8x96xf32>
    %408 = arith.negf %407 : vector<8x96xf32>
    %409 = math.exp %408 : vector<8x96xf32>
    %cst_123 = arith.constant 1.000000e+00 : f32
    %410 = vector.broadcast %cst_123 : f32 to vector<8x96xf32>
    %411 = arith.addf %410, %409 : vector<8x96xf32>
    %412 = arith.divf %410, %411 : vector<8x96xf32>
    %413 = vector.extract_strided_slice %406 {offsets = [0, 96], sizes = [8, 32], strides = [1, 1]} : vector<8x128xf32> to vector<8x32xf32>
    %414 = math.tanh %413 : vector<8x32xf32>
    %415 = vector.extract_strided_slice %412 {offsets = [0, 0], sizes = [8, 32], strides = [1, 1]} : vector<8x96xf32> to vector<8x32xf32>
    %416 = vector.extract_strided_slice %412 {offsets = [0, 32], sizes = [8, 32], strides = [1, 1]} : vector<8x96xf32> to vector<8x32xf32>
    %417 = vector.extract_strided_slice %412 {offsets = [0, 64], sizes = [8, 32], strides = [1, 1]} : vector<8x96xf32> to vector<8x32xf32>
    %418 = arith.mulf %416, %398 : vector<8x32xf32>
    %419 = arith.mulf %415, %414 : vector<8x32xf32>
    %420 = arith.addf %418, %419 : vector<8x32xf32>
    %421 = math.tanh %420 : vector<8x32xf32>
    %422 = arith.mulf %417, %421 : vector<8x32xf32>
    %423 = arith.index_cast %401 : i32 to index
    %424 = memref.load %arg0[%423] : memref<8xi32, #tpu.memory_space<smem>>
    %425 = vector.broadcast %424 : i32 to vector<8x1xi32>
    %426 = arith.cmpi slt, %0, %425 : vector<8x1xi32>
    %427 = vector.shape_cast %426 : vector<8x1xi1> to vector<8x1xi1>
    %428 = vector.broadcast %427 : vector<8x1xi1> to vector<8x32xi1>
    %429 = arith.select %428, %422, %395 : vector<8x32xi1>, vector<8x32xf32>
    %430 = vector.shape_cast %426 : vector<8x1xi1> to vector<8x1xi1>
    %431 = vector.broadcast %430 : vector<8x1xi1> to vector<8x32xi1>
    %432 = arith.select %431, %420, %398 : vector<8x32xi1>, vector<8x32xf32>
    %c3_i32_124 = arith.constant 3 : i32
    %c8_i32_125 = arith.constant 8 : i32
    %433 = arith.muli %c3_i32_124, %c8_i32_125 : i32
    %434 = tpu.assume_multiple %433, 8 : i32
    %c0_i32_126 = arith.constant 0 : i32
    %435 = arith.addi %c0_i32_126, %c3_i32_124 : i32
    %436 = arith.index_cast %434 : i32 to index
    %c0_127 = arith.constant 0 : index
    %437 = vector.load %arg11[%436, %c0_127] : memref<64x128xf32, #tpu.memory_space<vmem>>, vector<8x128xf32>
    %c0_128 = arith.constant 0 : index
    %c0_129 = arith.constant 0 : index
    %438 = vector.load %arg6[%c0_128, %c0_129] : memref<32x128xf32, #tpu.memory_space<vmem>>, vector<32x128xf32>
    %cst_130 = arith.constant dense<0.000000e+00> : vector<8x128xf32>
    %439 = tpu.matmul %429, %438, %cst_130 {dimension_numbers = #tpu.dot_dimension_numbers<[1], [0], [0], [1], [0, 0, 1, 1], [], []>} : vector<8x32xf32>, vector<32x128xf32>, vector<8x128xf32> -> vector<8x128xf32>
    %440 = arith.addf %437, %439 : vector<8x128xf32>
    %441 = vector.extract_strided_slice %440 {offsets = [0, 0], sizes = [8, 96], strides = [1, 1]} : vector<8x128xf32> to vector<8x96xf32>
    %442 = arith.negf %441 : vector<8x96xf32>
    %443 = math.exp %442 : vector<8x96xf32>
    %cst_131 = arith.constant 1.000000e+00 : f32
    %444 = vector.broadcast %cst_131 : f32 to vector<8x96xf32>
    %445 = arith.addf %444, %443 : vector<8x96xf32>
    %446 = arith.divf %444, %445 : vector<8x96xf32>
    %447 = vector.extract_strided_slice %440 {offsets = [0, 96], sizes = [8, 32], strides = [1, 1]} : vector<8x128xf32> to vector<8x32xf32>
    %448 = math.tanh %447 : vector<8x32xf32>
    %449 = vector.extract_strided_slice %446 {offsets = [0, 0], sizes = [8, 32], strides = [1, 1]} : vector<8x96xf32> to vector<8x32xf32>
    %450 = vector.extract_strided_slice %446 {offsets = [0, 32], sizes = [8, 32], strides = [1, 1]} : vector<8x96xf32> to vector<8x32xf32>
    %451 = vector.extract_strided_slice %446 {offsets = [0, 64], sizes = [8, 32], strides = [1, 1]} : vector<8x96xf32> to vector<8x32xf32>
    %452 = arith.mulf %450, %432 : vector<8x32xf32>
    %453 = arith.mulf %449, %448 : vector<8x32xf32>
    %454 = arith.addf %452, %453 : vector<8x32xf32>
    %455 = math.tanh %454 : vector<8x32xf32>
    %456 = arith.mulf %451, %455 : vector<8x32xf32>
    %457 = arith.index_cast %435 : i32 to index
    %458 = memref.load %arg0[%457] : memref<8xi32, #tpu.memory_space<smem>>
    %459 = vector.broadcast %458 : i32 to vector<8x1xi32>
    %460 = arith.cmpi slt, %0, %459 : vector<8x1xi32>
    %461 = vector.shape_cast %460 : vector<8x1xi1> to vector<8x1xi1>
    %462 = vector.broadcast %461 : vector<8x1xi1> to vector<8x32xi1>
    %463 = arith.select %462, %456, %429 : vector<8x32xi1>, vector<8x32xf32>
    %464 = vector.shape_cast %460 : vector<8x1xi1> to vector<8x1xi1>
    %465 = vector.broadcast %464 : vector<8x1xi1> to vector<8x32xi1>
    %466 = arith.select %465, %454, %432 : vector<8x32xi1>, vector<8x32xf32>
    %c4_i32_132 = arith.constant 4 : i32
    %c8_i32_133 = arith.constant 8 : i32
    %467 = arith.muli %c4_i32_132, %c8_i32_133 : i32
    %468 = tpu.assume_multiple %467, 8 : i32
    %c0_i32_134 = arith.constant 0 : i32
    %469 = arith.addi %c0_i32_134, %c4_i32_132 : i32
    %470 = arith.index_cast %468 : i32 to index
    %c0_135 = arith.constant 0 : index
    %471 = vector.load %arg11[%470, %c0_135] : memref<64x128xf32, #tpu.memory_space<vmem>>, vector<8x128xf32>
    %c0_136 = arith.constant 0 : index
    %c0_137 = arith.constant 0 : index
    %472 = vector.load %arg6[%c0_136, %c0_137] : memref<32x128xf32, #tpu.memory_space<vmem>>, vector<32x128xf32>
    %cst_138 = arith.constant dense<0.000000e+00> : vector<8x128xf32>
    %473 = tpu.matmul %463, %472, %cst_138 {dimension_numbers = #tpu.dot_dimension_numbers<[1], [0], [0], [1], [0, 0, 1, 1], [], []>} : vector<8x32xf32>, vector<32x128xf32>, vector<8x128xf32> -> vector<8x128xf32>
    %474 = arith.addf %471, %473 : vector<8x128xf32>
    %475 = vector.extract_strided_slice %474 {offsets = [0, 0], sizes = [8, 96], strides = [1, 1]} : vector<8x128xf32> to vector<8x96xf32>
    %476 = arith.negf %475 : vector<8x96xf32>
    %477 = math.exp %476 : vector<8x96xf32>
    %cst_139 = arith.constant 1.000000e+00 : f32
    %478 = vector.broadcast %cst_139 : f32 to vector<8x96xf32>
    %479 = arith.addf %478, %477 : vector<8x96xf32>
    %480 = arith.divf %478, %479 : vector<8x96xf32>
    %481 = vector.extract_strided_slice %474 {offsets = [0, 96], sizes = [8, 32], strides = [1, 1]} : vector<8x128xf32> to vector<8x32xf32>
    %482 = math.tanh %481 : vector<8x32xf32>
    %483 = vector.extract_strided_slice %480 {offsets = [0, 0], sizes = [8, 32], strides = [1, 1]} : vector<8x96xf32> to vector<8x32xf32>
    %484 = vector.extract_strided_slice %480 {offsets = [0, 32], sizes = [8, 32], strides = [1, 1]} : vector<8x96xf32> to vector<8x32xf32>
    %485 = vector.extract_strided_slice %480 {offsets = [0, 64], sizes = [8, 32], strides = [1, 1]} : vector<8x96xf32> to vector<8x32xf32>
    %486 = arith.mulf %484, %466 : vector<8x32xf32>
    %487 = arith.mulf %483, %482 : vector<8x32xf32>
    %488 = arith.addf %486, %487 : vector<8x32xf32>
    %489 = math.tanh %488 : vector<8x32xf32>
    %490 = arith.mulf %485, %489 : vector<8x32xf32>
    %491 = arith.index_cast %469 : i32 to index
    %492 = memref.load %arg0[%491] : memref<8xi32, #tpu.memory_space<smem>>
    %493 = vector.broadcast %492 : i32 to vector<8x1xi32>
    %494 = arith.cmpi slt, %0, %493 : vector<8x1xi32>
    %495 = vector.shape_cast %494 : vector<8x1xi1> to vector<8x1xi1>
    %496 = vector.broadcast %495 : vector<8x1xi1> to vector<8x32xi1>
    %497 = arith.select %496, %490, %463 : vector<8x32xi1>, vector<8x32xf32>
    %498 = vector.shape_cast %494 : vector<8x1xi1> to vector<8x1xi1>
    %499 = vector.broadcast %498 : vector<8x1xi1> to vector<8x32xi1>
    %500 = arith.select %499, %488, %466 : vector<8x32xi1>, vector<8x32xf32>
    %c5_i32_140 = arith.constant 5 : i32
    %c8_i32_141 = arith.constant 8 : i32
    %501 = arith.muli %c5_i32_140, %c8_i32_141 : i32
    %502 = tpu.assume_multiple %501, 8 : i32
    %c0_i32_142 = arith.constant 0 : i32
    %503 = arith.addi %c0_i32_142, %c5_i32_140 : i32
    %504 = arith.index_cast %502 : i32 to index
    %c0_143 = arith.constant 0 : index
    %505 = vector.load %arg11[%504, %c0_143] : memref<64x128xf32, #tpu.memory_space<vmem>>, vector<8x128xf32>
    %c0_144 = arith.constant 0 : index
    %c0_145 = arith.constant 0 : index
    %506 = vector.load %arg6[%c0_144, %c0_145] : memref<32x128xf32, #tpu.memory_space<vmem>>, vector<32x128xf32>
    %cst_146 = arith.constant dense<0.000000e+00> : vector<8x128xf32>
    %507 = tpu.matmul %497, %506, %cst_146 {dimension_numbers = #tpu.dot_dimension_numbers<[1], [0], [0], [1], [0, 0, 1, 1], [], []>} : vector<8x32xf32>, vector<32x128xf32>, vector<8x128xf32> -> vector<8x128xf32>
    %508 = arith.addf %505, %507 : vector<8x128xf32>
    %509 = vector.extract_strided_slice %508 {offsets = [0, 0], sizes = [8, 96], strides = [1, 1]} : vector<8x128xf32> to vector<8x96xf32>
    %510 = arith.negf %509 : vector<8x96xf32>
    %511 = math.exp %510 : vector<8x96xf32>
    %cst_147 = arith.constant 1.000000e+00 : f32
    %512 = vector.broadcast %cst_147 : f32 to vector<8x96xf32>
    %513 = arith.addf %512, %511 : vector<8x96xf32>
    %514 = arith.divf %512, %513 : vector<8x96xf32>
    %515 = vector.extract_strided_slice %508 {offsets = [0, 96], sizes = [8, 32], strides = [1, 1]} : vector<8x128xf32> to vector<8x32xf32>
    %516 = math.tanh %515 : vector<8x32xf32>
    %517 = vector.extract_strided_slice %514 {offsets = [0, 0], sizes = [8, 32], strides = [1, 1]} : vector<8x96xf32> to vector<8x32xf32>
    %518 = vector.extract_strided_slice %514 {offsets = [0, 32], sizes = [8, 32], strides = [1, 1]} : vector<8x96xf32> to vector<8x32xf32>
    %519 = vector.extract_strided_slice %514 {offsets = [0, 64], sizes = [8, 32], strides = [1, 1]} : vector<8x96xf32> to vector<8x32xf32>
    %520 = arith.mulf %518, %500 : vector<8x32xf32>
    %521 = arith.mulf %517, %516 : vector<8x32xf32>
    %522 = arith.addf %520, %521 : vector<8x32xf32>
    %523 = math.tanh %522 : vector<8x32xf32>
    %524 = arith.mulf %519, %523 : vector<8x32xf32>
    %525 = arith.index_cast %503 : i32 to index
    %526 = memref.load %arg0[%525] : memref<8xi32, #tpu.memory_space<smem>>
    %527 = vector.broadcast %526 : i32 to vector<8x1xi32>
    %528 = arith.cmpi slt, %0, %527 : vector<8x1xi32>
    %529 = vector.shape_cast %528 : vector<8x1xi1> to vector<8x1xi1>
    %530 = vector.broadcast %529 : vector<8x1xi1> to vector<8x32xi1>
    %531 = arith.select %530, %524, %497 : vector<8x32xi1>, vector<8x32xf32>
    %532 = vector.shape_cast %528 : vector<8x1xi1> to vector<8x1xi1>
    %533 = vector.broadcast %532 : vector<8x1xi1> to vector<8x32xi1>
    %534 = arith.select %533, %522, %500 : vector<8x32xi1>, vector<8x32xf32>
    %c6_i32_148 = arith.constant 6 : i32
    %c8_i32_149 = arith.constant 8 : i32
    %535 = arith.muli %c6_i32_148, %c8_i32_149 : i32
    %536 = tpu.assume_multiple %535, 8 : i32
    %c0_i32_150 = arith.constant 0 : i32
    %537 = arith.addi %c0_i32_150, %c6_i32_148 : i32
    %538 = arith.index_cast %536 : i32 to index
    %c0_151 = arith.constant 0 : index
    %539 = vector.load %arg11[%538, %c0_151] : memref<64x128xf32, #tpu.memory_space<vmem>>, vector<8x128xf32>
    %c0_152 = arith.constant 0 : index
    %c0_153 = arith.constant 0 : index
    %540 = vector.load %arg6[%c0_152, %c0_153] : memref<32x128xf32, #tpu.memory_space<vmem>>, vector<32x128xf32>
    %cst_154 = arith.constant dense<0.000000e+00> : vector<8x128xf32>
    %541 = tpu.matmul %531, %540, %cst_154 {dimension_numbers = #tpu.dot_dimension_numbers<[1], [0], [0], [1], [0, 0, 1, 1], [], []>} : vector<8x32xf32>, vector<32x128xf32>, vector<8x128xf32> -> vector<8x128xf32>
    %542 = arith.addf %539, %541 : vector<8x128xf32>
    %543 = vector.extract_strided_slice %542 {offsets = [0, 0], sizes = [8, 96], strides = [1, 1]} : vector<8x128xf32> to vector<8x96xf32>
    %544 = arith.negf %543 : vector<8x96xf32>
    %545 = math.exp %544 : vector<8x96xf32>
    %cst_155 = arith.constant 1.000000e+00 : f32
    %546 = vector.broadcast %cst_155 : f32 to vector<8x96xf32>
    %547 = arith.addf %546, %545 : vector<8x96xf32>
    %548 = arith.divf %546, %547 : vector<8x96xf32>
    %549 = vector.extract_strided_slice %542 {offsets = [0, 96], sizes = [8, 32], strides = [1, 1]} : vector<8x128xf32> to vector<8x32xf32>
    %550 = math.tanh %549 : vector<8x32xf32>
    %551 = vector.extract_strided_slice %548 {offsets = [0, 0], sizes = [8, 32], strides = [1, 1]} : vector<8x96xf32> to vector<8x32xf32>
    %552 = vector.extract_strided_slice %548 {offsets = [0, 32], sizes = [8, 32], strides = [1, 1]} : vector<8x96xf32> to vector<8x32xf32>
    %553 = vector.extract_strided_slice %548 {offsets = [0, 64], sizes = [8, 32], strides = [1, 1]} : vector<8x96xf32> to vector<8x32xf32>
    %554 = arith.mulf %552, %534 : vector<8x32xf32>
    %555 = arith.mulf %551, %550 : vector<8x32xf32>
    %556 = arith.addf %554, %555 : vector<8x32xf32>
    %557 = math.tanh %556 : vector<8x32xf32>
    %558 = arith.mulf %553, %557 : vector<8x32xf32>
    %559 = arith.index_cast %537 : i32 to index
    %560 = memref.load %arg0[%559] : memref<8xi32, #tpu.memory_space<smem>>
    %561 = vector.broadcast %560 : i32 to vector<8x1xi32>
    %562 = arith.cmpi slt, %0, %561 : vector<8x1xi32>
    %563 = vector.shape_cast %562 : vector<8x1xi1> to vector<8x1xi1>
    %564 = vector.broadcast %563 : vector<8x1xi1> to vector<8x32xi1>
    %565 = arith.select %564, %558, %531 : vector<8x32xi1>, vector<8x32xf32>
    %566 = vector.shape_cast %562 : vector<8x1xi1> to vector<8x1xi1>
    %567 = vector.broadcast %566 : vector<8x1xi1> to vector<8x32xi1>
    %568 = arith.select %567, %556, %534 : vector<8x32xi1>, vector<8x32xf32>
    %c7_i32_156 = arith.constant 7 : i32
    %c8_i32_157 = arith.constant 8 : i32
    %569 = arith.muli %c7_i32_156, %c8_i32_157 : i32
    %570 = tpu.assume_multiple %569, 8 : i32
    %c0_i32_158 = arith.constant 0 : i32
    %571 = arith.addi %c0_i32_158, %c7_i32_156 : i32
    %572 = arith.index_cast %570 : i32 to index
    %c0_159 = arith.constant 0 : index
    %573 = vector.load %arg11[%572, %c0_159] : memref<64x128xf32, #tpu.memory_space<vmem>>, vector<8x128xf32>
    %c0_160 = arith.constant 0 : index
    %c0_161 = arith.constant 0 : index
    %574 = vector.load %arg6[%c0_160, %c0_161] : memref<32x128xf32, #tpu.memory_space<vmem>>, vector<32x128xf32>
    %cst_162 = arith.constant dense<0.000000e+00> : vector<8x128xf32>
    %575 = tpu.matmul %565, %574, %cst_162 {dimension_numbers = #tpu.dot_dimension_numbers<[1], [0], [0], [1], [0, 0, 1, 1], [], []>} : vector<8x32xf32>, vector<32x128xf32>, vector<8x128xf32> -> vector<8x128xf32>
    %576 = arith.addf %573, %575 : vector<8x128xf32>
    %577 = vector.extract_strided_slice %576 {offsets = [0, 0], sizes = [8, 96], strides = [1, 1]} : vector<8x128xf32> to vector<8x96xf32>
    %578 = arith.negf %577 : vector<8x96xf32>
    %579 = math.exp %578 : vector<8x96xf32>
    %cst_163 = arith.constant 1.000000e+00 : f32
    %580 = vector.broadcast %cst_163 : f32 to vector<8x96xf32>
    %581 = arith.addf %580, %579 : vector<8x96xf32>
    %582 = arith.divf %580, %581 : vector<8x96xf32>
    %583 = vector.extract_strided_slice %576 {offsets = [0, 96], sizes = [8, 32], strides = [1, 1]} : vector<8x128xf32> to vector<8x32xf32>
    %584 = math.tanh %583 : vector<8x32xf32>
    %585 = vector.extract_strided_slice %582 {offsets = [0, 0], sizes = [8, 32], strides = [1, 1]} : vector<8x96xf32> to vector<8x32xf32>
    %586 = vector.extract_strided_slice %582 {offsets = [0, 32], sizes = [8, 32], strides = [1, 1]} : vector<8x96xf32> to vector<8x32xf32>
    %587 = vector.extract_strided_slice %582 {offsets = [0, 64], sizes = [8, 32], strides = [1, 1]} : vector<8x96xf32> to vector<8x32xf32>
    %588 = arith.mulf %586, %568 : vector<8x32xf32>
    %589 = arith.mulf %585, %584 : vector<8x32xf32>
    %590 = arith.addf %588, %589 : vector<8x32xf32>
    %591 = math.tanh %590 : vector<8x32xf32>
    %592 = arith.mulf %587, %591 : vector<8x32xf32>
    %593 = arith.index_cast %571 : i32 to index
    %594 = memref.load %arg0[%593] : memref<8xi32, #tpu.memory_space<smem>>
    %595 = vector.broadcast %594 : i32 to vector<8x1xi32>
    %596 = arith.cmpi slt, %0, %595 : vector<8x1xi32>
    %597 = vector.shape_cast %596 : vector<8x1xi1> to vector<8x1xi1>
    %598 = vector.broadcast %597 : vector<8x1xi1> to vector<8x32xi1>
    %599 = arith.select %598, %592, %565 : vector<8x32xi1>, vector<8x32xf32>
    %600 = vector.shape_cast %596 : vector<8x1xi1> to vector<8x1xi1>
    %601 = vector.broadcast %600 : vector<8x1xi1> to vector<8x32xi1>
    %602 = arith.select %601, %590, %568 : vector<8x32xi1>, vector<8x32xf32>
    %c8_i32_164 = arith.constant 8 : i32
    %c0_165 = arith.constant 0 : index
    %c0_166 = arith.constant 0 : index
    %603 = vector.load %arg8[%c0_165, %c0_166] : memref<32x1xf32, #tpu.memory_space<vmem>>, vector<32x1xf32>
    %cst_167 = arith.constant dense<0.000000e+00> : vector<8x1xf32>
    %604 = tpu.matmul %599, %603, %cst_167 {dimension_numbers = #tpu.dot_dimension_numbers<[1], [0], [0], [1], [0, 0, 1, 1], [], []>} : vector<8x32xf32>, vector<32x1xf32>, vector<8x1xf32> -> vector<8x1xf32>
    %c0_168 = arith.constant 0 : index
    %c0_169 = arith.constant 0 : index
    %605 = vector.load %arg9[%c0_168, %c0_169] : memref<1x1xf32, #tpu.memory_space<vmem>>, vector<1x1xf32>
    %606 = vector.broadcast %605 : vector<1x1xf32> to vector<8x1xf32>
    %607 = arith.addf %604, %606 : vector<8x1xf32>
    %c0_170 = arith.constant 0 : index
    %c0_171 = arith.constant 0 : index
    %608 = vector.load %arg10[%c0_170, %c0_171] : memref<8x1xf32, #tpu.memory_space<vmem>>, vector<8x1xf32>
    tpu.vector_store %arg10[%c0_170, %c0_171], %607 {strides = array<i32>} : memref<8x1xf32, #tpu.memory_space<vmem>>, vector<8x1xf32>,
    return
  }
}

</mosaic_0001>

<bundles_post_ra>
// kernel: lstm_sarcasm_forward.1
= control target key start
LH: loop header
LB: loop body
LE: loop exit
PB: predicated region body
PF: predicated region fallthrough
CT: control target
= control target key end

     0   :  { %s3408_s0 = inlined_call_operand.vmem [shape: s32[8], index: 0, kind: input, shape index: {}]   ;;  %s3409_s1 = inlined_call_operand.vmem [shape: f32[64,32], index: 1, kind: input, shape index: {}]   ;;  %s3410_s2 = inlined_call_operand.vmem [shape: f32[32,128], index: 2, kind: input, shape index: {}]   ;;  %s3411_s3 = inlined_call_operand.vmem [shape: f32[32,128], index: 3, kind: input, shape index: {}]   ;;  %s3412_s4 = inlined_call_operand.vmem [shape: f32[1,128], index: 4, kind: input, shape index: {}]   ;;  %s3413_s5 = inlined_call_operand.vmem [shape: f32[32,128], index: 5, kind: input, shape index: {}]   ;;  %s3414_s6 = inlined_call_operand.vmem [shape: f32[32,128], index: 6, kind: input, shape index: {}]   ;;  %s3415_s7 = inlined_call_operand.vmem [shape: f32[1,128], index: 7, kind: input, shape index: {}]   ;;  %s3416_s8 = inlined_call_operand.vmem [shape: f32[32,1], index: 8, kind: input, shape index: {}]   ;;  %s3417_s9 = inlined_call_operand.<no memory space> [shape: f32[1,1], index: 9, kind: input, shape index: {}]   ;;  %s3418_s10 = inlined_call_operand.vmem [shape: f32[8,1], index: 10, kind: output, shape index: {}]  }
   0x1   :  { %v15_v0 = vstv %s3417_s9 }
   0x2   :  { %16 = vst [vmem:[#allocation4] sm:$0x1] %v15_v0 }
   0x3   :  { %17 = vsyncpa [#allocation6], 0  ;;  %s24_s17 = sshll.u32 %s3408_s0, 4  ;;  %s25_s17 = int_to_ptr.vmem [resolvable:$true] %s24_s17 }
   0x4   :  { %s2779_s18 = scalar_lea.vmem %s25_s17, 16  ;;  %p2784_p1 = scmp.lt.s32.totalorder %s25_s17, %s25_s17 }
   0x5   :  { %p2780_p0 = scmp.ne.s32.totalorder %s25_s17, %s2779_s18  ;;  %p2785_p2 = scmp.lt.s32.totalorder %s2779_s18, %s2779_s18 }
   0x7   :  { %p2786_p3 = por %p2785_p2, %p2784_p1 }
   0x9   :  { %p2787_p4 = pnand %p2786_p3, %p2780_p0 }
   0xb   :  { %2790 = shalt.err (!%p2787_p4)
}
   0xc   :  { %s2793_s19 = smov [#allocation5]  }
   0xd   :  { %27 = dma.vmem_to_smem %s25_s17, 16, %s2793_s19, [#allocation6]  }
   0xe   :  { %2791 = dma.done.wait [#allocation6], 16  }
   0xf   :  { %2792 = vsyncadd [#allocation6], 4294967280 }
  0x10   :  { %49 = sfence }
  0x11   :  { %v64_v1 = vld [vmem:[%s3410_s2 + $0x18] sm:$0xff]  ;;  %v63_v2 = vld [vmem:[%s3410_s2 + $0x10] sm:$0xff]  ;;  %v2794_v4 = vmov 0.0   ;;  %v62_v6 = vld [vmem:[%s3410_s2 + $0x8] sm:$0xff]  ;;  %vm71_vm0 = vcmask 261120   ;;  %vm2795_vm1 = vmmov 0   ;;  %v50_v30 = vlaneseq }
  0x12   :  { %v2868_v3 = vld [vmem:[%s3411_s3 + $0x18] sm:$0xff]  ;;  %2419 = vmatprep.subr.mxu0 %v64_v1  ;;  %2439 = vmatprep.subr.mxu1 %v2794_v4  ;;  %v2874_v5 = vld [vmem:[%s3411_s3 + $0x10] sm:$0xff]  ;;  %v53_v7 = vld [vmem:[%s3409_s1] sm:$0xff]  ;;  %s2796_s18 = smov 32   ;;  %s2797_s19 = smov 64   ;;  %vm2239_vm10 = vcmask 7168  }
  0x13   :  { %2420 = vmatpush3.msra.mxu0 %v64_v1  ;;  %2440 = vmatpush3.msra.mxu1 %v2868_v3  ;;  %v61_v8 = vld [vmem:[%s3410_s2] sm:$0xff]  ;;  %v2891_v9 = vld [vmem:[%s3411_s3 + $0x8] sm:$0xff]  ;;  %v2939_v31 = vshrl.u32 %v50_v30, 7  ;;  %v55_v53 = vld [vmem:[%s3409_s1 + $0x10] sm:$0xff]  ;;  %s2258_s30 = sld [smem:[#allocation5 + $0x1]] }
  0x14   :  { %2421 = vmatprep.subr.mxu0 %v63_v2  ;;  %2441 = vmatprep.subr.mxu1 %v2794_v4  ;;  %v54_v10 = vld [vmem:[%s3409_s1 + $0x8] sm:$0xff]  ;;  %v2901_v11 = vld [vmem:[%s3411_s3] sm:$0xff]  ;;  %v56_v54 = vld [vmem:[%s3409_s1 + $0x18] sm:$0xff]  ;;  %s2264_s11 = sld [smem:[#allocation5 + $0x3]] }
  0x15   :  { %2422 = vmatpush3.msra.mxu0 %v63_v2  ;;  %2442 = vmatpush3.msra.mxu1 %v2874_v5  ;;  %v2933_v13 = vld [vmem:[%s3412_s4] ss:$0 sm:$0xff]  ;;  %s312_s4 = sld [smem:[#allocation5]]  ;;  %v58_v56 = vld [vmem:[%s3409_s1 + $0x28] sm:$0xff]  ;;  %v59_v57 = vld [vmem:[%s3409_s1 + $0x30] sm:$0xff] }
  0x16   :  { %2423 = vmatprep.subr.mxu0 %v62_v6  ;;  %2443 = vmatprep.subr.mxu1 %v2794_v4  ;;  %v57_v55 = vld [vmem:[%s3409_s1 + $0x20] sm:$0xff]  ;;  %v60_v58 = vld [vmem:[%s3409_s1 + $0x38] sm:$0xff]  ;;  %s2261_s1 = sld [smem:[#allocation5 + $0x2]] }
  0x17   :  { %2424 = vmatpush3.msra.mxu0 %v62_v6  ;;  %2427 = vmatprep.mubr.msk.f32.mxu0 %vm71_vm0, %v53_v7  ;;  %s2267_s12 = sld [smem:[#allocation5 + $0x4]] }
  0x18   :  { %2425 = vmatprep.subr.mxu0 %v61_v8  ;;  %2444 = vmatpush3.msra.mxu1 %v2891_v9  ;;  %s2270_s15 = sld [smem:[#allocation5 + $0x5]] }
  0x19   :  { %2426 = vmatpush3.msra.mxu0 %v61_v8  ;;  %2445 = vmatprep.subr.mxu1 %v2794_v4  ;;  %v428_v60 = vstv %s2258_s30 }
  0x1a   :  { %2428 = vmatmul.mubr.msk.f32.vlgmr.msra.gmra.mxu0 %vm71_vm0, %v54_v10  ;;  %2446 = vmatpush3.msra.mxu1 %v2901_v11  ;;  %vm2994_vm3 = vcmp.lt.s32.totalorder %v2939_v31, %v428_v60 }
  0x1b   :  { %2447 = vmatprep.mubr.msk.f32.mxu1 %vm2795_vm1, %v2794_v4  ;;  %2450 = vmatprep.subr.mxu1 %v2794_v4  ;;  %v313_v32 = vstv %s312_s4 }
  0x1c   :  { %2448 = vmatmul.mubr.f32.vlgmr.msra.gmra.mxu1 %v2794_v4  ;;  %2461 = vmatprep.subr.mxu0 %v2794_v4  ;;  %vm2942_vm2 = vcmp.lt.s32.totalorder %v2939_v31, %v313_v32  ;;  %v544_v30 = vstv %s2261_s1 }
  0x1d   :  { %2451 = vmatpush3.msra.mxu1 %v2868_v3  ;;  %2458 = vmatprep.mubr.msk.f32.mxu1 %vm2795_vm1, %v2794_v4  ;;  %vm3028_vm4 = vcmp.lt.s32.totalorder %v2939_v31, %v544_v30 }
  0x1e   :  { %2452 = vmatprep.subr.mxu1 %v2794_v4  ;;  %2462 = vmatpush3.msra.mxu0 %v2868_v3 }
  0x1f   :  { %2453 = vmatpush3.msra.mxu1 %v2874_v5  ;;  %2463 = vmatprep.subr.mxu0 %v2794_v4 }
  0x20   :  { %2454 = vmatprep.subr.mxu1 %v2794_v4  ;;  %2464 = vmatpush3.msra.mxu0 %v2874_v5 }
  0x21   :  { %2455 = vmatpush3.msra.mxu1 %v2891_v9  ;;  %2465 = vmatprep.subr.mxu0 %v2794_v4 }
  0x22   :  { %2456 = vmatprep.subr.mxu1 %v2794_v4  ;;  %2466 = vmatpush3.msra.mxu0 %v2891_v9 }
  0x23   :  { %2457 = vmatpush3.msra.mxu1 %v2901_v11  ;;  %2467 = vmatprep.subr.mxu0 %v2794_v4 }
  0x24   :  { %2468 = vmatpush3.msra.mxu0 %v2901_v11  ;;  %2472 = vmatprep.subr.mxu1 %v2794_v4 }
  0x25   :  { %2483 = vmatprep.subr.mxu0 %v2794_v4  ;;  %2430 = vmatprep.mubr.msk.f32.mxu0 %vm71_vm0, %v55_v53 }
  0x26   :  { %2431 = vmatmul.mubr.msk.f32.gmra.mxu0 %vm71_vm0, %v56_v54  ;;  %v660_v54 = vstv %s2264_s11 }
  0x27   :  { %2433 = vmatprep.mubr.msk.f32.mxu0 %vm71_vm0, %v57_v55  ;;  %vm3054_vm5 = vcmp.lt.s32.totalorder %v2939_v31, %v660_v54 }
  0x2a   :  { %2434 = vmatmul.mubr.msk.f32.gmra.mxu0 %vm71_vm0, %v58_v56 }
  0x2b   :  { %2436 = vmatprep.mubr.msk.f32.mxu0 %vm71_vm0, %v59_v57 }
  0x2e   :  { %2437 = vmatmul.mubr.msk.f32.gmra.mxu0 %vm71_vm0, %v60_v58 }
  0x2f   :  { %2469 = vmatprep.mubr.msk.f32.mxu0 %vm2795_vm1, %v2794_v4 }
  0xda   :  { %v2429_v12 = vpop.f32.mrf.mxu0 }
  0xdb   :  { %v168_v38 = vadd.f32 %v2429_v12, %v2933_v13 }
  0xdc   :  { %v162_v14 = vpop.f32.mrf.mxu0  ;;  %v283_v15 = vpop.f32.mrf.mxu1 }
  0xdd   :  { %v163_v16 = vadd.f32 %v2933_v13, %v162_v14 }
  0xde   :  { %v2449_v17 = vpop.f32.mrf.mxu1 }
  0xdf   :  { %v287_v18 = vadd.f32 %v283_v15, %v163_v16 }
  0xe1   :  { %2651 = vtanh.f32 %v287_v18  ;;  %v2255_v20 = vmul.f32 -1.442695, %v287_v18 }
  0xe3   :  { %2653 = vpow2.f32 %v2255_v20 }
  0xe6   :  { %v2432_v2 = vpop.f32.mrf.mxu0 }
  0xe8   :  { %v172_v6 = vpop.f32.mrf.mxu0 }
  0xe9   :  { %v173_v14 = vadd.f32 %v2933_v13, %v172_v6 }
  0xea   :  { %v3013_v7 = vpop.f32.mrf.mxu0 }
  0xec   :  { %v3015_v8 = vpop.f32.mrf.mxu0 }
  0xed   :  { %v183_v60 = vadd.f32 %v2933_v13, %v3015_v8 }
  0xee   :  { %v2652_v19 = vpop.eup %2651  ;;  %v3017_v10 = vpop.f32.mrf.mxu0 }
  0xef   :  { %297 = vrot.lane.b32.xlu0 %v2652_v19, %s2796_s18 }
  0xf0   :  { %v2654_v21 = vpop.eup %2653  ;;  %v3019_v12 = vpop.f32.mrf.mxu0 }
  0xf1   :  { %v291_v22 = vadd.f32 1.0, %v2654_v21 }
  0xf3   :  { %2655 = vrcp.f32 %v291_v22 }
 0x100   :  { %v2656_v23 = vpop.eup %2655 }
 0x101   :  { %v295_v26 = vmul.f32 0.0, %v2656_v23 }
 0x161   :  { %v298_v24 = vpop.permute.xlu0 %297 }
 0x162   :  { %v300_v25 = vmul.f32 %v2656_v23, %v298_v24 }
 0x164   :  { %302 = vrot.lane.b32.xlu0 %v300_v25, %s2796_s18 }
 0x1d6   :  { %v303_v27 = vpop.permute.xlu0 %302 }
 0x1d7   :  { %v305_v28 = vadd.f32 %v303_v27, %v295_v26 }
 0x1d9   :  { %2657 = vtanh.f32 %v305_v28  ;;  %v318_v49 = vsel %vm2942_vm2, %v305_v28, 0.0 }
 0x1e6   :  { %v2658_v29 = vpop.eup %2657 }
 0x1e7   :  { %308 = vrot.lane.b32.xlu1 %v2658_v29, %s2796_s18 }
 0x259   :  { %v309_v33 = vpop.permute.xlu1 %308 }
 0x25a   :  { %v311_v34 = vmul.f32 %v2656_v23, %v309_v33 }
 0x25c   :  { %v317_v36 = vsel %vm2942_vm2, %v311_v34, 0.0 }
 0x25d   :  { %320 = vrot.lane.b32.xlu1 %v317_v36, %s2797_s19 }
 0x2cf   :  { %v321_v37 = vpop.permute.xlu1 %320 }
 0x2d0   :  { %323 = vst.msk [vmem:[#allocation3] sm:$0xff] %vm71_vm0, %v321_v37  ;;  %2459 = vmatmul.mubr.msk.f32.vlgmr.msra.gmra.mxu1 %vm71_vm0, %v321_v37 }
 0x2d1   :  { %2473 = vmatpush3.msra.mxu1 %v2868_v3  ;;  %2480 = vmatprep.mubr.msk.f32.mxu1 %vm2795_vm1, %v2794_v4 }
 0x2d2   :  { %2474 = vmatprep.subr.mxu1 %v2794_v4 }
 0x2d3   :  { %2475 = vmatpush3.msra.mxu1 %v2874_v5 }
 0x2d4   :  { %2476 = vmatprep.subr.mxu1 %v2794_v4 }
 0x2d5   :  { %2477 = vmatpush3.msra.mxu1 %v2891_v9 }
 0x2d6   :  { %2478 = vmatprep.subr.mxu1 %v2794_v4 }
 0x2d7   :  { %2479 = vmatpush3.msra.mxu1 %v2901_v11 }
 0x2d8   :  { %2494 = vmatprep.subr.mxu1 %v2794_v4 }
 0x390   :  { %v398_v39 = vpop.f32.mrf.mxu1 }
 0x391   :  { %v402_v40 = vadd.f32 %v398_v39, %v168_v38  ;;  %v178_v38 = vadd.f32 %v2432_v2, %v2933_v13 }
 0x392   :  { %v2460_v41 = vpop.f32.mrf.mxu1 }
 0x393   :  { %2659 = vtanh.f32 %v402_v40  ;;  %v2257_v43 = vmul.f32 -1.442695, %v402_v40 }
 0x395   :  { %2661 = vpow2.f32 %v2257_v43 }
 0x3a0   :  { %v2660_v42 = vpop.eup %2659 }
 0x3a1   :  { %412 = vrot.lane.b32.xlu0 %v2660_v42, %s2796_s18 }
 0x3a2   :  { %v2662_v44 = vpop.eup %2661 }
 0x3a3   :  { %v406_v45 = vadd.f32 1.0, %v2662_v44 }
 0x3a5   :  { %2663 = vrcp.f32 %v406_v45 }
 0x3b2   :  { %v2664_v46 = vpop.eup %2663 }
 0x3b3   :  { %v410_v50 = vmul.f32 %v2664_v46, %v318_v49 }
 0x413   :  { %v413_v47 = vpop.permute.xlu0 %412 }
 0x414   :  { %v415_v48 = vmul.f32 %v2664_v46, %v413_v47 }
 0x416   :  { %417 = vrot.lane.b32.xlu1 %v415_v48, %s2796_s18 }
 0x488   :  { %v418_v51 = vpop.permute.xlu1 %417 }
 0x489   :  { %v420_v52 = vadd.f32 %v418_v51, %v410_v50 }
 0x48b   :  { %2665 = vtanh.f32 %v420_v52  ;;  %v433_v25 = vsel %vm2994_vm3, %v420_v52, %v318_v49 }
 0x498   :  { %v2666_v59 = vpop.eup %2665 }
 0x499   :  { %423 = vrot.lane.b32.xlu0 %v2666_v59, %s2796_s18 }
 0x50b   :  { %v424_v61 = vpop.permute.xlu0 %423 }
 0x50c   :  { %v426_v62 = vmul.f32 %v2664_v46, %v424_v61 }
 0x50e   :  { %v432_v0 = vsel %vm2994_vm3, %v426_v62, %v317_v36 }
 0x50f   :  { %435 = vrot.lane.b32.xlu1 %v432_v0, %s2797_s19 }
 0x581   :  { %v436_v1 = vpop.permute.xlu1 %435 }
 0x582   :  { %439 = vst.msk [vmem:[#allocation3 + $0x8] sm:$0xff] %vm71_vm0, %v436_v1  ;;  %2470 = vmatmul.mubr.msk.f32.vlgmr.msra.gmra.mxu0 %vm71_vm0, %v436_v1 }
 0x583   :  { %2484 = vmatpush3.msra.mxu0 %v2868_v3  ;;  %2491 = vmatprep.mubr.msk.f32.mxu0 %vm2795_vm1, %v2794_v4 }
 0x584   :  { %2485 = vmatprep.subr.mxu0 %v2794_v4 }
 0x585   :  { %2486 = vmatpush3.msra.mxu0 %v2874_v5 }
 0x586   :  { %2487 = vmatprep.subr.mxu0 %v2794_v4 }
 0x587   :  { %2488 = vmatpush3.msra.mxu0 %v2891_v9 }
 0x588   :  { %2489 = vmatprep.subr.mxu0 %v2794_v4 }
 0x589   :  { %2490 = vmatpush3.msra.mxu0 %v2901_v11 }
 0x58a   :  { %2505 = vmatprep.subr.mxu0 %v2794_v4 }
 0x642   :  { %v514_v15 = vpop.f32.mrf.mxu0 }
 0x643   :  { %v518_v16 = vadd.f32 %v514_v15, %v173_v14 }
 0x644   :  { %v2471_v17 = vpop.f32.mrf.mxu0 }
 0x645   :  { %2667 = vtanh.f32 %v518_v16  ;;  %v2260_v19 = vmul.f32 -1.442695, %v518_v16 }
 0x647   :  { %2669 = vpow2.f32 %v2260_v19 }
 0x652   :  { %v2668_v18 = vpop.eup %2667 }
 0x653   :  { %528 = vrot.lane.b32.xlu0 %v2668_v18, %s2796_s18 }
 0x654   :  { %v2670_v20 = vpop.eup %2669 }
 0x655   :  { %v522_v21 = vadd.f32 1.0, %v2670_v20 }
 0x657   :  { %2671 = vrcp.f32 %v522_v21 }
 0x664   :  { %v2672_v22 = vpop.eup %2671 }
 0x665   :  { %v526_v26 = vmul.f32 %v2672_v22, %v433_v25 }
 0x6c5   :  { %v529_v23 = vpop.permute.xlu0 %528 }
 0x6c6   :  { %v531_v24 = vmul.f32 %v2672_v22, %v529_v23 }
 0x6c8   :  { %533 = vrot.lane.b32.xlu1 %v531_v24, %s2796_s18 }
 0x73a   :  { %v534_v27 = vpop.permute.xlu1 %533 }
 0x73b   :  { %v536_v28 = vadd.f32 %v534_v27, %v526_v26 }
 0x73d   :  { %2673 = vtanh.f32 %v536_v28  ;;  %v549_v49 = vsel %vm3028_vm4, %v536_v28, %v433_v25 }
 0x74a   :  { %v2674_v29 = vpop.eup %2673 }
 0x74b   :  { %539 = vrot.lane.b32.xlu0 %v2674_v29, %s2796_s18 }
 0x7bd   :  { %v540_v32 = vpop.permute.xlu0 %539 }
 0x7be   :  { %v542_v33 = vmul.f32 %v2672_v22, %v540_v32  ;;  %v776_v22 = vstv %s2267_s12 }
 0x7bf   :  { %vm3080_vm6 = vcmp.lt.s32.totalorder %v2939_v31, %v776_v22  ;;  %v3167_v22 = vld [vmem:[%s3414_s6 + $0x8] sm:$0xff] }
 0x7c0   :  { %v548_v36 = vsel %vm3028_vm4, %v542_v33, %v432_v0 }
 0x7c1   :  { %551 = vrot.lane.b32.xlu1 %v548_v36, %s2797_s19 }
 0x833   :  { %v552_v37 = vpop.permute.xlu1 %551 }
 0x834   :  { %555 = vst.msk [vmem:[#allocation3 + $0x10] sm:$0xff] %vm71_vm0, %v552_v37  ;;  %2481 = vmatmul.mubr.msk.f32.vlgmr.msra.gmra.mxu1 %vm71_vm0, %v552_v37 }
 0x835   :  { %2495 = vmatpush3.msra.mxu1 %v2868_v3  ;;  %2502 = vmatprep.mubr.msk.f32.mxu1 %vm2795_vm1, %v2794_v4 }
 0x836   :  { %2496 = vmatprep.subr.mxu1 %v2794_v4 }
 0x837   :  { %2497 = vmatpush3.msra.mxu1 %v2874_v5 }
 0x838   :  { %2498 = vmatprep.subr.mxu1 %v2794_v4 }
 0x839   :  { %2499 = vmatpush3.msra.mxu1 %v2891_v9 }
 0x83a   :  { %2500 = vmatprep.subr.mxu1 %v2794_v4 }
 0x83b   :  { %2501 = vmatpush3.msra.mxu1 %v2901_v11  ;;  %v1138_v54 = vld [vmem:[#allocation3 + $0x10] sm:$0xff] }
 0x83c   :  { %2516 = vmatprep.subr.mxu1 %v2794_v4 }
 0x8f4   :  { %v630_v39 = vpop.f32.mrf.mxu1 }
 0x8f5   :  { %v634_v40 = vadd.f32 %v630_v39, %v178_v38 }
 0x8f6   :  { %v2482_v41 = vpop.f32.mrf.mxu1 }
 0x8f7   :  { %2675 = vtanh.f32 %v634_v40  ;;  %v2263_v43 = vmul.f32 -1.442695, %v634_v40  ;;  %v1147_v41 = vld [vmem:[%s3413_s5 + $0x18] sm:$0xff] }
 0x8f9   :  { %2677 = vpow2.f32 %v2263_v43  ;;  %v892_v43 = vstv %s2270_s15 }
 0x8fa   :  { %vm3110_vm7 = vcmp.lt.s32.totalorder %v2939_v31, %v892_v43 }
 0x904   :  { %v2676_v42 = vpop.eup %2675 }
 0x905   :  { %644 = vrot.lane.b32.xlu0 %v2676_v42, %s2796_s18 }
 0x906   :  { %v2678_v44 = vpop.eup %2677 }
 0x907   :  { %v638_v45 = vadd.f32 1.0, %v2678_v44 }
 0x909   :  { %2679 = vrcp.f32 %v638_v45 }
 0x916   :  { %v2680_v46 = vpop.eup %2679 }
 0x917   :  { %v642_v50 = vmul.f32 %v2680_v46, %v549_v49 }
 0x977   :  { %v645_v47 = vpop.permute.xlu0 %644 }
 0x978   :  { %v647_v48 = vmul.f32 %v2680_v46, %v645_v47 }
 0x97a   :  { %649 = vrot.lane.b32.xlu1 %v647_v48, %s2796_s18 }
 0x9ec   :  { %v650_v51 = vpop.permute.xlu1 %649 }
 0x9ed   :  { %v652_v52 = vadd.f32 %v650_v51, %v642_v50  ;;  %v1136_v50 = vld [vmem:[#allocation3] sm:$0xff]  ;;  %v1145_v51 = vld [vmem:[%s3413_s5 + $0x8] sm:$0xff] }
 0x9ef   :  { %2681 = vtanh.f32 %v652_v52  ;;  %v665_v8 = vsel %vm3054_vm5, %v652_v52, %v549_v49  ;;  %v1146_v49 = vld [vmem:[%s3413_s5 + $0x10] sm:$0xff]  ;;  %v1144_v52 = vld [vmem:[%s3413_s5] sm:$0xff]  ;;  %s2273_s5 = sld [smem:[#allocation5 + $0x6]] }
 0x9fc   :  { %v2682_v53 = vpop.eup %2681 }
 0x9fd   :  { %655 = vrot.lane.b32.xlu0 %v2682_v53, %s2796_s18  ;;  %v1137_v53 = vld [vmem:[#allocation3 + $0x8] sm:$0xff] }
 0xa6f   :  { %v656_v55 = vpop.permute.xlu0 %655 }
 0xa70   :  { %v658_v56 = vmul.f32 %v2680_v46, %v656_v55 }
 0xa72   :  { %v664_v58 = vsel %vm3054_vm5, %v658_v56, %v548_v36 }
 0xa73   :  { %667 = vrot.lane.b32.xlu1 %v664_v58, %s2797_s19 }
 0xae5   :  { %v668_v59 = vpop.permute.xlu1 %667 }
 0xae6   :  { %671 = vst.msk [vmem:[#allocation3 + $0x18] sm:$0xff] %vm71_vm0, %v668_v59  ;;  %2492 = vmatmul.mubr.msk.f32.vlgmr.msra.gmra.mxu0 %vm71_vm0, %v668_v59  ;;  %v193_v59 = vadd.f32 %v2933_v13, %v3019_v12 }
 0xae7   :  { %2506 = vmatpush3.msra.mxu0 %v2868_v3  ;;  %2513 = vmatprep.mubr.msk.f32.mxu0 %vm2795_vm1, %v2794_v4 }
 0xae8   :  { %2507 = vmatprep.subr.mxu0 %v2794_v4 }
 0xae9   :  { %2508 = vmatpush3.msra.mxu0 %v2874_v5 }
 0xaea   :  { %2509 = vmatprep.subr.mxu0 %v2794_v4 }
 0xaeb   :  { %2510 = vmatpush3.msra.mxu0 %v2891_v9 }
 0xaec   :  { %2511 = vmatprep.subr.mxu0 %v2794_v4 }
 0xaed   :  { %2512 = vmatpush3.msra.mxu0 %v2901_v11  ;;  %v1139_v55 = vld [vmem:[#allocation3 + $0x18] sm:$0xff] }
 0xaee   :  { %2527 = vmatprep.subr.mxu0 %v1147_v41 }
 0xba6   :  { %v746_v61 = vpop.f32.mrf.mxu0 }
 0xba7   :  { %v750_v62 = vadd.f32 %v746_v61, %v183_v60 }
 0xba8   :  { %v2493_v0 = vpop.f32.mrf.mxu0 }
 0xba9   :  { %2683 = vtanh.f32 %v750_v62  ;;  %v2266_v2 = vmul.f32 -1.442695, %v750_v62 }
 0xbab   :  { %2685 = vpow2.f32 %v2266_v2 }
 0xbb6   :  { %v2684_v1 = vpop.eup %2683 }
 0xbb7   :  { %760 = vrot.lane.b32.xlu0 %v2684_v1, %s2796_s18 }
 0xbb8   :  { %v2686_v6 = vpop.eup %2685 }
 0xbb9   :  { %v754_v14 = vadd.f32 1.0, %v2686_v6 }
 0xbbb   :  { %2687 = vrcp.f32 %v754_v14 }
 0xbc8   :  { %v2688_v15 = vpop.eup %2687 }
 0xbc9   :  { %v758_v18 = vmul.f32 %v2688_v15, %v665_v8 }
 0xc29   :  { %v761_v16 = vpop.permute.xlu0 %760 }
 0xc2a   :  { %v763_v17 = vmul.f32 %v2688_v15, %v761_v16 }
 0xc2c   :  { %765 = vrot.lane.b32.xlu1 %v763_v17, %s2796_s18 }
 0xc9e   :  { %v766_v19 = vpop.permute.xlu1 %765 }
 0xc9f   :  { %v768_v20 = vadd.f32 %v766_v19, %v758_v18 }
 0xca1   :  { %2689 = vtanh.f32 %v768_v20 }
 0xcae   :  { %v2690_v21 = vpop.eup %2689 }
 0xcaf   :  { %771 = vrot.lane.b32.xlu0 %v2690_v21, %s2796_s18  ;;  %v3160_v21 = vld [vmem:[%s3414_s6 + $0x10] sm:$0xff] }
 0xd21   :  { %v772_v23 = vpop.permute.xlu0 %771 }
 0xd22   :  { %v774_v24 = vmul.f32 %v2688_v15, %v772_v23  ;;  %v3174_v23 = vld [vmem:[%s3414_s6] sm:$0xff] }
 0xd24   :  { %v780_v26 = vsel %vm3080_vm6, %v774_v24, %v664_v58  ;;  %v1008_v24 = vstv %s2273_s5 }
 0xd25   :  { %783 = vrot.lane.b32.xlu1 %v780_v26, %s2797_s19  ;;  %vm3180_vm8 = vcmp.lt.s32.totalorder %v2939_v31, %v1008_v24 }
 0xd97   :  { %v784_v27 = vpop.permute.xlu1 %783 }
 0xd98   :  { %787 = vst.msk [vmem:[#allocation3 + $0x20] sm:$0xff] %vm71_vm0, %v784_v27  ;;  %2503 = vmatmul.mubr.msk.f32.vlgmr.msra.gmra.mxu1 %vm71_vm0, %v784_v27 }
 0xd99   :  { %2517 = vmatpush3.msra.mxu1 %v2868_v3  ;;  %2524 = vmatprep.mubr.msk.f32.mxu1 %vm2795_vm1, %v2794_v4  ;;  %v188_v3 = vadd.f32 %v3013_v7, %v2933_v13  ;;  %v781_v7 = vsel %vm3080_vm6, %v768_v20, %v665_v8  ;;  %v3154_v20 = vld [vmem:[%s3414_s6 + $0x18] sm:$0xff] }
 0xd9a   :  { %2518 = vmatprep.subr.mxu1 %v2794_v4 }
 0xd9b   :  { %2519 = vmatpush3.msra.mxu1 %v2874_v5 }
 0xd9c   :  { %2520 = vmatprep.subr.mxu1 %v2794_v4 }
 0xd9d   :  { %2521 = vmatpush3.msra.mxu1 %v2891_v9 }
 0xd9e   :  { %2522 = vmatprep.subr.mxu1 %v2794_v4 }
 0xd9f   :  { %2523 = vmatpush3.msra.mxu1 %v2901_v11  ;;  %v1140_v56 = vld [vmem:[#allocation3 + $0x20] sm:$0xff] }
 0xda0   :  { %2547 = vmatprep.subr.mxu1 %v2794_v4 }
 0xe58   :  { %v862_v28 = vpop.f32.mrf.mxu1 }
 0xe59   :  { %v866_v29 = vadd.f32 %v862_v28, %v188_v3  ;;  %v2154_v3 = vld [vmem:[%s3416_s8 + $0x8] sm:$0xff] }
 0xe5a   :  { %v2504_v30 = vpop.f32.mrf.mxu1 }
 0xe5b   :  { %2691 = vtanh.f32 %v866_v29  ;;  %v2269_v5 = vmul.f32 -1.442695, %v866_v29 }
 0xe5d   :  { %2693 = vpow2.f32 %v2269_v5 }
 0xe68   :  { %v2692_v32 = vpop.eup %2691 }
 0xe69   :  { %876 = vrot.lane.b32.xlu0 %v2692_v32, %s2796_s18  ;;  %v198_v32 = vadd.f32 %v3017_v10, %v2933_v13 }
 0xe6a   :  { %v2694_v33 = vpop.eup %2693 }
 0xe6b   :  { %v870_v9 = vadd.f32 1.0, %v2694_v33 }
 0xe6d   :  { %2695 = vrcp.f32 %v870_v9 }
 0xe7a   :  { %v2696_v36 = vpop.eup %2695 }
 0xe7b   :  { %v874_v38 = vmul.f32 %v2696_v36, %v781_v7 }
 0xedb   :  { %v877_v37 = vpop.permute.xlu0 %876 }
 0xedc   :  { %v879_v11 = vmul.f32 %v2696_v36, %v877_v37 }
 0xede   :  { %881 = vrot.lane.b32.xlu1 %v879_v11, %s2796_s18  ;;  %v3222_v11 = vld [vmem:[%s3415_s7] ss:$0 sm:$0xff]  ;;  %s2276_s7 = sld [smem:[#allocation5 + $0x7]] }
 0xf50   :  { %v882_v39 = vpop.permute.xlu1 %881 }
 0xf51   :  { %v884_v40 = vadd.f32 %v882_v39, %v874_v38 }
 0xf53   :  { %2697 = vtanh.f32 %v884_v40  ;;  %v3144_v12 = vsel %vm3110_vm7, %v884_v40, %v781_v7 }
 0xf60   :  { %v2698_v42 = vpop.eup %2697 }
 0xf61   :  { %887 = vrot.lane.b32.xlu0 %v2698_v42, %s2796_s18 }
 0xfd3   :  { %v888_v44 = vpop.permute.xlu0 %887 }
 0xfd4   :  { %v890_v45 = vmul.f32 %v2696_v36, %v888_v44 }
 0xfd6   :  { %v3116_v47 = vsel %vm3110_vm7, %v890_v45, %v780_v26 }
 0xfd7   :  { %899 = vrot.lane.b32.xlu1 %v3116_v47, %s2797_s19 }
0x1049   :  { %v900_v48 = vpop.permute.xlu1 %899 }
0x104a   :  { %903 = vst.msk [vmem:[#allocation3 + $0x28] sm:$0xff] %vm71_vm0, %v900_v48  ;;  %2514 = vmatmul.mubr.msk.f32.vlgmr.msra.gmra.mxu0 %vm71_vm0, %v900_v48 }
0x104b   :  { %2528 = vmatpush3.msra.mxu0 %v1147_v41  ;;  %2535 = vmatprep.mubr.msk.f32.mxu0 %vm71_vm0, %v1136_v50 }
0x104c   :  { %2529 = vmatprep.subr.mxu0 %v1146_v49 }
0x104d   :  { %2530 = vmatpush3.msra.mxu0 %v1146_v49 }
0x104e   :  { %2531 = vmatprep.subr.mxu0 %v1145_v51 }
0x104f   :  { %2532 = vmatpush3.msra.mxu0 %v1145_v51 }
0x1050   :  { %2533 = vmatprep.subr.mxu0 %v1144_v52 }
0x1051   :  { %2534 = vmatpush3.msra.mxu0 %v1144_v52  ;;  %v1141_v58 = vld [vmem:[#allocation3 + $0x28] sm:$0xff] }
0x1052   :  { %2536 = vmatmul.mubr.msk.f32.vlgmr.msra.gmra.mxu0 %vm71_vm0, %v1137_v53  ;;  %2569 = vmatprep.subr.mxu0 %v2794_v4 }
0x1053   :  { %2538 = vmatprep.mubr.msk.f32.mxu0 %vm71_vm0, %v1138_v54  ;;  %2570 = vmatpush3.msra.mxu0 %v3154_v20 }
0x1054   :  { %2571 = vmatprep.subr.mxu0 %v2794_v4 }
0x1055   :  { %2572 = vmatpush3.msra.mxu0 %v3160_v21 }
0x1056   :  { %2539 = vmatmul.mubr.msk.f32.gmra.mxu0 %vm71_vm0, %v1139_v55  ;;  %2573 = vmatprep.subr.mxu0 %v2794_v4 }
0x1057   :  { %2541 = vmatprep.mubr.msk.f32.mxu0 %vm71_vm0, %v1140_v56  ;;  %2574 = vmatpush3.msra.mxu0 %v3167_v22 }
0x1058   :  { %2575 = vmatprep.subr.mxu0 %v2794_v4 }
0x1059   :  { %2576 = vmatpush3.msra.mxu0 %v3174_v23 }
0x105a   :  { %2542 = vmatmul.mubr.msk.f32.gmra.mxu0 %vm71_vm0, %v1141_v58  ;;  %2591 = vmatprep.subr.mxu0 %v2794_v4 }
0x110a   :  { %v978_v60 = vpop.f32.mrf.mxu0 }
0x110b   :  { %v982_v61 = vadd.f32 %v978_v60, %v193_v59 }
0x110c   :  { %v2515_v62 = vpop.f32.mrf.mxu0 }
0x110d   :  { %2699 = vtanh.f32 %v982_v61  ;;  %v2272_v1 = vmul.f32 -1.442695, %v982_v61 }
0x110f   :  { %2701 = vpow2.f32 %v2272_v1 }
0x1112   :  { %v3217_v5 = vpop.f32.mrf.mxu0 }
0x1114   :  { %v1244_v37 = vpop.f32.mrf.mxu0 }
0x1115   :  { %v1245_v7 = vadd.f32 %v3222_v11, %v1244_v37 }
0x1116   :  { %v2540_v35 = vpop.f32.mrf.mxu0 }
0x1117   :  { %v1260_v63 = vadd.f32 %v2540_v35, %v3222_v11 }
0x111a   :  { %v2700_v0 = vpop.eup %2699 }
0x111b   :  { %992 = vrot.lane.b32.xlu0 %v2700_v0, %s2796_s18 }
0x111c   :  { %v2702_v2 = vpop.eup %2701 }
0x111d   :  { %v986_v6 = vadd.f32 1.0, %v2702_v2 }
0x111f   :  { %2703 = vrcp.f32 %v986_v6 }
0x112c   :  { %v2704_v14 = vpop.eup %2703 }
0x112d   :  { %v990_v17 = vmul.f32 %v2704_v14, %v3144_v12 }
0x118d   :  { %v993_v15 = vpop.permute.xlu0 %992 }
0x118e   :  { %v995_v16 = vmul.f32 %v2704_v14, %v993_v15  ;;  %v1124_v15 = vstv %s2276_s7 }
0x118f   :  { %vm3253_vm9 = vcmp.lt.s32.totalorder %v2939_v31, %v1124_v15 }
0x1190   :  { %997 = vrot.lane.b32.xlu1 %v995_v16, %s2796_s18 }
0x1202   :  { %v998_v8 = vpop.permute.xlu1 %997 }
0x1203   :  { %v3147_v18 = vadd.f32 %v998_v8, %v990_v17 }
0x1205   :  { %2705 = vtanh.f32 %v3147_v18  ;;  %v1013_v0 = vsel %vm3180_vm8, %v3147_v18, %v3144_v12  ;;  %v1250_v18 = vadd.f32 %v3217_v5, %v3222_v11 }
0x1212   :  { %v2706_v19 = vpop.eup %2705 }
0x1213   :  { %1003 = vrot.lane.b32.xlu0 %v2706_v19, %s2796_s18 }
0x1285   :  { %v1004_v26 = vpop.permute.xlu0 %1003 }
0x1286   :  { %v1006_v27 = vmul.f32 %v2704_v14, %v1004_v26 }
0x1288   :  { %v3187_v28 = vsel %vm3180_vm8, %v1006_v27, %v3116_v47 }
0x1289   :  { %1015 = vrot.lane.b32.xlu1 %v3187_v28, %s2797_s19 }
0x12fb   :  { %v1016_v29 = vpop.permute.xlu1 %1015 }
0x12fc   :  { %1019 = vst.msk [vmem:[#allocation3 + $0x30] sm:$0xff] %vm71_vm0, %v1016_v29  ;;  %2525 = vmatmul.mubr.msk.f32.vlgmr.msra.gmra.mxu1 %vm71_vm0, %v1016_v29 }
0x12fd   :  { %2548 = vmatpush3.msra.mxu1 %v3154_v20  ;;  %2555 = vmatprep.mubr.msk.f32.mxu1 %vm2795_vm1, %v2794_v4 }
0x12fe   :  { %2549 = vmatprep.subr.mxu1 %v2794_v4 }
0x12ff   :  { %2550 = vmatpush3.msra.mxu1 %v3160_v21 }
0x1300   :  { %2551 = vmatprep.subr.mxu1 %v2794_v4 }
0x1301   :  { %2552 = vmatpush3.msra.mxu1 %v3167_v22 }
0x1302   :  { %2553 = vmatprep.subr.mxu1 %v2794_v4 }
0x1303   :  { %2554 = vmatpush3.msra.mxu1 %v3174_v23  ;;  %v1142_v30 = vld [vmem:[#allocation3 + $0x30] sm:$0xff] }
0x1304   :  { %2556 = vmatmul.mubr.f32.vlgmr.msra.gmra.mxu1 %v2794_v4  ;;  %2544 = vmatprep.mubr.msk.f32.mxu0 %vm71_vm0, %v1142_v30 }
0x1305   :  { %2558 = vmatprep.subr.mxu1 %v2794_v4  ;;  %2566 = vmatprep.mubr.msk.f32.mxu1 %vm2795_vm1, %v2794_v4 }
0x1306   :  { %2559 = vmatpush3.msra.mxu1 %v3154_v20 }
0x1307   :  { %2560 = vmatprep.subr.mxu1 %v2794_v4 }
0x1308   :  { %2561 = vmatpush3.msra.mxu1 %v3160_v21 }
0x1309   :  { %2562 = vmatprep.subr.mxu1 %v2794_v4 }
0x130a   :  { %2563 = vmatpush3.msra.mxu1 %v3167_v22 }
0x130b   :  { %2564 = vmatprep.subr.mxu1 %v2794_v4 }
0x130c   :  { %2565 = vmatpush3.msra.mxu1 %v3174_v23 }
0x130d   :  { %2580 = vmatprep.subr.mxu1 %v2794_v4 }
0x13bc   :  { %v1094_v33 = vpop.f32.mrf.mxu1 }
0x13bd   :  { %v1098_v9 = vadd.f32 %v1094_v33, %v198_v32 }
0x13be   :  { %v2526_v36 = vpop.f32.mrf.mxu1 }
0x13bf   :  { %v2275_v52 = vmul.f32 -1.442695, %v1098_v9 }
0x13c4   :  { %v1362_v38 = vpop.f32.mrf.mxu1 }
0x13c5   :  { %v1366_v39 = vadd.f32 %v1362_v38, %v1245_v7 }
0x13c6   :  { %v2557_v40 = vpop.f32.mrf.mxu1 }
0x13c7   :  { %2707 = vtanh.f32 %v1366_v39  ;;  %v2286_v13 = vmul.f32 -1.442695, %v1366_v39 }
0x13c9   :  { %2709 = vpow2.f32 %v2286_v13 }
0x13d4   :  { %v2708_v41 = vpop.eup %2707 }
0x13d5   :  { %1376 = vrot.lane.b32.xlu0 %v2708_v41, %s2796_s18 }
0x13d6   :  { %v2710_v10 = vpop.eup %2709 }
0x13d7   :  { %v1370_v42 = vadd.f32 1.0, %v2710_v10 }
0x13d9   :  { %2711 = vrcp.f32 %v1370_v42  ;;  %v1254_v42 = vpop.f32.mrf.mxu0 }
0x13e6   :  { %v2712_v43 = vpop.eup %2711 }
0x13e7   :  { %v1374_v47 = vmul.f32 0.0, %v2712_v43 }
0x1447   :  { %v1377_v44 = vpop.permute.xlu0 %1376 }
0x1448   :  { %v1379_v45 = vmul.f32 %v2712_v43, %v1377_v44 }
0x144a   :  { %1381 = vrot.lane.b32.xlu1 %v1379_v45, %s2796_s18 }
0x14bc   :  { %v1382_v48 = vpop.permute.xlu1 %1381 }
0x14bd   :  { %v3227_v49 = vadd.f32 %v1382_v48, %v1374_v47  ;;  %v1255_v48 = vadd.f32 %v3222_v11, %v1254_v42 }
0x14bf   :  { %2713 = vtanh.f32 %v3227_v49  ;;  %v1397_v36 = vsel %vm2942_vm2, %v3227_v49, 0.0 }
0x14c0   :  { %2715 = vtanh.f32 %v1098_v9 }
0x14c1   :  { %2717 = vpow2.f32 %v2275_v52 }
0x14cc   :  { %v2714_v50 = vpop.eup %2713 }
0x14cd   :  { %1387 = vrot.lane.b32.xlu0 %v2714_v50, %s2796_s18  ;;  %v2716_v51 = vpop.eup %2715 }
0x14ce   :  { %v2718_v53 = vpop.eup %2717 }
0x14cf   :  { %v1102_v54 = vadd.f32 1.0, %v2718_v53 }
0x14d1   :  { %1108 = vrot.lane.b32.xlu0 %v2716_v51, %s2796_s18  ;;  %2719 = vrcp.f32 %v1102_v54 }
0x14de   :  { %v2720_v59 = vpop.eup %2719 }
0x14df   :  { %v1106_v1 = vmul.f32 %v2720_v59, %v1013_v0 }
0x153f   :  { %v1388_v55 = vpop.permute.xlu0 %1387 }
0x1540   :  { %v1390_v56 = vmul.f32 %v2712_v43, %v1388_v55  ;;  %v3287_v43 = vpop.f32.mrf.mxu0 }
0x1541   :  { %v1270_v57 = vadd.f32 %v3287_v43, %v3222_v11 }
0x1542   :  { %v1396_v58 = vsel %vm2942_vm2, %v1390_v56, 0.0  ;;  %v3289_v44 = vpop.f32.mrf.mxu0 }
0x1543   :  { %1400 = vrot.lane.b32.xlu1 %v1396_v58, %s2797_s19  ;;  %v1109_v60 = vpop.permute.xlu0 %1108  ;;  %v1265_v34 = vadd.f32 %v3222_v11, %v3289_v44 }
0x1544   :  { %v1111_v61 = vmul.f32 %v2720_v59, %v1109_v60 }
0x1546   :  { %1113 = vrot.lane.b32.xlu0 %v1111_v61, %s2796_s18 }
0x15b5   :  { %v1401_v62 = vpop.permute.xlu1 %1400 }
0x15b6   :  { %2567 = vmatmul.mubr.msk.f32.vlgmr.msra.gmra.mxu1 %vm71_vm0, %v1401_v62 }
0x15b7   :  { %2581 = vmatpush3.msra.mxu1 %v3154_v20  ;;  %2588 = vmatprep.mubr.msk.f32.mxu1 %vm2795_vm1, %v2794_v4 }
0x15b8   :  { %v1114_v2 = vpop.permute.xlu0 %1113  ;;  %2582 = vmatprep.subr.mxu1 %v2794_v4 }
0x15b9   :  { %v1116_v6 = vadd.f32 %v1114_v2, %v1106_v1  ;;  %2583 = vmatpush3.msra.mxu1 %v3160_v21 }
0x15ba   :  { %2584 = vmatprep.subr.mxu1 %v2794_v4 }
0x15bb   :  { %2721 = vtanh.f32 %v1116_v6  ;;  %2585 = vmatpush3.msra.mxu1 %v3167_v22 }
0x15bc   :  { %2586 = vmatprep.subr.mxu1 %v2794_v4 }
0x15bd   :  { %2587 = vmatpush3.msra.mxu1 %v3174_v23 }
0x15be   :  { %2602 = vmatprep.subr.mxu1 %v2794_v4 }
0x15c8   :  { %v2722_v14 = vpop.eup %2721 }
0x15c9   :  { %1119 = vrot.lane.b32.xlu0 %v2722_v14, %s2796_s18 }
0x163b   :  { %v1120_v16 = vpop.permute.xlu0 %1119 }
0x163c   :  { %v1122_v17 = vmul.f32 %v2720_v59, %v1120_v16 }
0x163e   :  { %v1128_v8 = vsel %vm3253_vm9, %v1122_v17, %v3187_v28 }
0x163f   :  { %1130 = vrot.lane.b32.xlu0 %v1128_v8, %s2797_s19 }
0x1676   :  { %v1470_v19 = vpop.f32.mrf.mxu1 }
0x1677   :  { %v1474_v24 = vadd.f32 %v1470_v19, %v1250_v18 }
0x1678   :  { %v2568_v26 = vpop.f32.mrf.mxu1 }
0x1679   :  { %2723 = vtanh.f32 %v1474_v24  ;;  %v2288_v28 = vmul.f32 -1.442695, %v1474_v24 }
0x167b   :  { %2725 = vpow2.f32 %v2288_v28 }
0x1686   :  { %v2724_v27 = vpop.eup %2723 }
0x1687   :  { %1484 = vrot.lane.b32.xlu1 %v2724_v27, %s2796_s18 }
0x1688   :  { %v2726_v30 = vpop.eup %2725 }
0x1689   :  { %v1478_v32 = vadd.f32 1.0, %v2726_v30 }
0x168b   :  { %2727 = vrcp.f32 %v1478_v32 }
0x1698   :  { %v2728_v5 = vpop.eup %2727 }
0x1699   :  { %v1482_v37 = vmul.f32 %v2728_v5, %v1397_v36 }
0x16b1   :  { %v1131_v31 = vpop.permute.xlu0 %1130 }
0x16b2   :  { %1134 = vst.msk [vmem:[#allocation3 + $0x38] sm:$0xff] %vm71_vm0, %v1131_v31 }
0x16b9   :  { %v1143_v29 = vld [vmem:[#allocation3 + $0x38] sm:$0xff] }
0x16ba   :  { %2545 = vmatmul.mubr.msk.f32.gmra.mxu0 %vm71_vm0, %v1143_v29 }
0x16bb   :  { %2577 = vmatprep.mubr.msk.f32.mxu0 %vm2795_vm1, %v2794_v4 }
0x16f9   :  { %v1485_v33 = vpop.permute.xlu1 %1484 }
0x16fa   :  { %v1487_v9 = vmul.f32 %v2728_v5, %v1485_v33 }
0x16fc   :  { %1489 = vrot.lane.b32.xlu1 %v1487_v9, %s2796_s18 }
0x176e   :  { %v1490_v7 = vpop.permute.xlu1 %1489 }
0x176f   :  { %v1492_v38 = vadd.f32 %v1490_v7, %v1482_v37 }
0x1771   :  { %2729 = vtanh.f32 %v1492_v38  ;;  %v1505_v60 = vsel %vm2994_vm3, %v1492_v38, %v1397_v36 }
0x177a   :  { %v3291_v45 = vpop.f32.mrf.mxu0 }
0x177b   :  { %v1280_v46 = vadd.f32 %v3291_v45, %v3222_v11 }
0x177c   :  { %v3293_v47 = vpop.f32.mrf.mxu0 }
0x177d   :  { %v1275_v25 = vadd.f32 %v3222_v11, %v3293_v47 }
0x177e   :  { %v2730_v39 = vpop.eup %2729 }
0x177f   :  { %1495 = vrot.lane.b32.xlu1 %v2730_v39, %s2796_s18 }
0x17f1   :  { %v1496_v40 = vpop.permute.xlu1 %1495 }
0x17f2   :  { %v1498_v41 = vmul.f32 %v2728_v5, %v1496_v40 }
0x17f4   :  { %v1504_v13 = vsel %vm2994_vm3, %v1498_v41, %v1396_v58 }
0x17f5   :  { %1508 = vrot.lane.b32.xlu1 %v1504_v13, %s2797_s19 }
0x1867   :  { %v1509_v10 = vpop.permute.xlu1 %1508 }
0x1868   :  { %2578 = vmatmul.mubr.msk.f32.vlgmr.msra.gmra.mxu0 %vm71_vm0, %v1509_v10 }
0x1869   :  { %2592 = vmatpush3.msra.mxu0 %v3154_v20  ;;  %2599 = vmatprep.mubr.msk.f32.mxu0 %vm2795_vm1, %v2794_v4 }
0x186a   :  { %2593 = vmatprep.subr.mxu0 %v2794_v4 }
0x186b   :  { %2594 = vmatpush3.msra.mxu0 %v3160_v21 }
0x186c   :  { %2595 = vmatprep.subr.mxu0 %v2794_v4 }
0x186d   :  { %2596 = vmatpush3.msra.mxu0 %v3167_v22 }
0x186e   :  { %2597 = vmatprep.subr.mxu0 %v2794_v4 }
0x186f   :  { %2598 = vmatpush3.msra.mxu0 %v3174_v23 }
0x1870   :  { %2613 = vmatprep.subr.mxu0 %v2794_v4 }
0x1928   :  { %v1578_v49 = vpop.f32.mrf.mxu0 }
0x1929   :  { %v1582_v50 = vadd.f32 %v1578_v49, %v1255_v48 }
0x192a   :  { %v2579_v51 = vpop.f32.mrf.mxu0 }
0x192b   :  { %2731 = vtanh.f32 %v1582_v50  ;;  %v2291_v53 = vmul.f32 -1.442695, %v1582_v50 }
0x192d   :  { %2733 = vpow2.f32 %v2291_v53 }
0x1938   :  { %v2732_v52 = vpop.eup %2731 }
0x1939   :  { %1592 = vrot.lane.b32.xlu0 %v2732_v52, %s2796_s18 }
0x193a   :  { %v2734_v54 = vpop.eup %2733 }
0x193b   :  { %v1586_v55 = vadd.f32 1.0, %v2734_v54 }
0x193d   :  { %2735 = vrcp.f32 %v1586_v55 }
0x194a   :  { %v2736_v56 = vpop.eup %2735 }
0x194b   :  { %v1590_v61 = vmul.f32 %v2736_v56, %v1505_v60 }
0x19ab   :  { %v1593_v58 = vpop.permute.xlu0 %1592 }
0x19ac   :  { %v1595_v59 = vmul.f32 %v2736_v56, %v1593_v58 }
0x19ae   :  { %1597 = vrot.lane.b32.xlu1 %v1595_v59, %s2796_s18 }
0x1a20   :  { %v1598_v62 = vpop.permute.xlu1 %1597 }
0x1a21   :  { %v1600_v0 = vadd.f32 %v1598_v62, %v1590_v61 }
0x1a23   :  { %2737 = vtanh.f32 %v1600_v0  ;;  %v1613_v28 = vsel %vm3028_vm4, %v1600_v0, %v1505_v60 }
0x1a30   :  { %v2738_v1 = vpop.eup %2737 }
0x1a31   :  { %1603 = vrot.lane.b32.xlu0 %v2738_v1, %s2796_s18 }
0x1aa3   :  { %v1604_v2 = vpop.permute.xlu0 %1603 }
0x1aa4   :  { %v1606_v6 = vmul.f32 %v2736_v56, %v1604_v2 }
0x1aa6   :  { %v1612_v14 = vsel %vm3028_vm4, %v1606_v6, %v1504_v13 }
0x1aa7   :  { %1616 = vrot.lane.b32.xlu1 %v1612_v14, %s2797_s19 }
0x1b19   :  { %v1617_v15 = vpop.permute.xlu1 %1616 }
0x1b1a   :  { %2589 = vmatmul.mubr.msk.f32.vlgmr.msra.gmra.mxu1 %vm71_vm0, %v1617_v15 }
0x1b1b   :  { %2603 = vmatpush3.msra.mxu1 %v3154_v20  ;;  %2610 = vmatprep.mubr.msk.f32.mxu1 %vm2795_vm1, %v2794_v4 }
0x1b1c   :  { %2604 = vmatprep.subr.mxu1 %v2794_v4 }
0x1b1d   :  { %2605 = vmatpush3.msra.mxu1 %v3160_v21 }
0x1b1e   :  { %2606 = vmatprep.subr.mxu1 %v2794_v4 }
0x1b1f   :  { %2607 = vmatpush3.msra.mxu1 %v3167_v22 }
0x1b20   :  { %2608 = vmatprep.subr.mxu1 %v2794_v4 }
0x1b21   :  { %2609 = vmatpush3.msra.mxu1 %v3174_v23 }
0x1b22   :  { %2624 = vmatprep.subr.mxu1 %v2794_v4 }
0x1bda   :  { %v1686_v16 = vpop.f32.mrf.mxu1 }
0x1bdb   :  { %v1690_v17 = vadd.f32 %v1686_v16, %v1260_v63 }
0x1bdc   :  { %v2590_v8 = vpop.f32.mrf.mxu1 }
0x1bdd   :  { %2739 = vtanh.f32 %v1690_v17  ;;  %v2294_v19 = vmul.f32 -1.442695, %v1690_v17 }
0x1bdf   :  { %2741 = vpow2.f32 %v2294_v19 }
0x1bea   :  { %v2740_v18 = vpop.eup %2739 }
0x1beb   :  { %1700 = vrot.lane.b32.xlu0 %v2740_v18, %s2796_s18 }
0x1bec   :  { %v2742_v24 = vpop.eup %2741 }
0x1bed   :  { %v1694_v26 = vadd.f32 1.0, %v2742_v24 }
0x1bef   :  { %2743 = vrcp.f32 %v1694_v26 }
0x1bfc   :  { %v2744_v27 = vpop.eup %2743 }
0x1bfd   :  { %v1698_v30 = vmul.f32 %v2744_v27, %v1613_v28 }
0x1c5d   :  { %v1701_v31 = vpop.permute.xlu0 %1700 }
0x1c5e   :  { %v1703_v29 = vmul.f32 %v2744_v27, %v1701_v31 }
0x1c60   :  { %1705 = vrot.lane.b32.xlu1 %v1703_v29, %s2796_s18 }
0x1cd2   :  { %v1706_v32 = vpop.permute.xlu1 %1705 }
0x1cd3   :  { %v1708_v5 = vadd.f32 %v1706_v32, %v1698_v30 }
0x1cd5   :  { %2745 = vtanh.f32 %v1708_v5  ;;  %v1721_v44 = vsel %vm3054_vm5, %v1708_v5, %v1613_v28 }
0x1ce2   :  { %v2746_v33 = vpop.eup %2745 }
0x1ce3   :  { %1711 = vrot.lane.b32.xlu0 %v2746_v33, %s2796_s18 }
0x1d55   :  { %v1712_v9 = vpop.permute.xlu0 %1711 }
0x1d56   :  { %v1714_v36 = vmul.f32 %v2744_v27, %v1712_v9 }
0x1d58   :  { %v1720_v37 = vsel %vm3054_vm5, %v1714_v36, %v1612_v14 }
0x1d59   :  { %1724 = vrot.lane.b32.xlu1 %v1720_v37, %s2797_s19 }
0x1dcb   :  { %v1725_v7 = vpop.permute.xlu1 %1724 }
0x1dcc   :  { %2600 = vmatmul.mubr.msk.f32.vlgmr.msra.gmra.mxu0 %vm71_vm0, %v1725_v7 }
0x1dcd   :  { %2614 = vmatpush3.msra.mxu0 %v3154_v20  ;;  %2621 = vmatprep.mubr.msk.f32.mxu0 %vm2795_vm1, %v2794_v4 }
0x1dce   :  { %2615 = vmatprep.subr.mxu0 %v2794_v4 }
0x1dcf   :  { %2616 = vmatpush3.msra.mxu0 %v3160_v21 }
0x1dd0   :  { %2617 = vmatprep.subr.mxu0 %v2794_v4 }
0x1dd1   :  { %2618 = vmatpush3.msra.mxu0 %v3167_v22 }
0x1dd2   :  { %2619 = vmatprep.subr.mxu0 %v2794_v4 }
0x1dd3   :  { %2620 = vmatpush3.msra.mxu0 %v3174_v23 }
0x1dd4   :  { %2635 = vmatprep.subr.mxu0 %v2794_v4 }
0x1e8c   :  { %v1794_v38 = vpop.f32.mrf.mxu0 }
0x1e8d   :  { %v1798_v39 = vadd.f32 %v1794_v38, %v1265_v34 }
0x1e8e   :  { %v2601_v40 = vpop.f32.mrf.mxu0 }
0x1e8f   :  { %2747 = vtanh.f32 %v1798_v39  ;;  %v2297_v13 = vmul.f32 -1.442695, %v1798_v39 }
0x1e91   :  { %2749 = vpow2.f32 %v2297_v13 }
0x1e9c   :  { %v2748_v41 = vpop.eup %2747 }
0x1e9d   :  { %1808 = vrot.lane.b32.xlu0 %v2748_v41, %s2796_s18 }
0x1e9e   :  { %v2750_v10 = vpop.eup %2749 }
0x1e9f   :  { %v1802_v35 = vadd.f32 1.0, %v2750_v10 }
0x1ea1   :  { %2751 = vrcp.f32 %v1802_v35 }
0x1eae   :  { %v2752_v42 = vpop.eup %2751 }
0x1eaf   :  { %v1806_v50 = vmul.f32 %v2752_v42, %v1721_v44 }
0x1f0f   :  { %v1809_v48 = vpop.permute.xlu0 %1808 }
0x1f10   :  { %v1811_v49 = vmul.f32 %v2752_v42, %v1809_v48 }
0x1f12   :  { %1813 = vrot.lane.b32.xlu1 %v1811_v49, %s2796_s18 }
0x1f84   :  { %v1814_v51 = vpop.permute.xlu1 %1813 }
0x1f85   :  { %v1816_v52 = vadd.f32 %v1814_v51, %v1806_v50 }
0x1f87   :  { %2753 = vtanh.f32 %v1816_v52 }
0x1f94   :  { %v2754_v53 = vpop.eup %2753 }
0x1f95   :  { %1819 = vrot.lane.b32.xlu0 %v2754_v53, %s2796_s18  ;;  %v2155_v53 = vld [vmem:[%s3416_s8 + $0x10] sm:$0xff] }
0x2007   :  { %v1820_v54 = vpop.permute.xlu0 %1819 }
0x2008   :  { %v1822_v55 = vmul.f32 %v2752_v42, %v1820_v54  ;;  %v2153_v54 = vld [vmem:[%s3416_s8] sm:$0xff] }
0x200a   :  { %v1828_v56 = vsel %vm3080_vm6, %v1822_v55, %v1720_v37 }
0x200b   :  { %1832 = vrot.lane.b32.xlu1 %v1828_v56, %s2797_s19 }
0x207d   :  { %v1833_v58 = vpop.permute.xlu1 %1832 }
0x207e   :  { %2611 = vmatmul.mubr.msk.f32.vlgmr.msra.gmra.mxu1 %vm71_vm0, %v1833_v58 }
0x207f   :  { %2625 = vmatpush3.msra.mxu1 %v3154_v20  ;;  %2632 = vmatprep.mubr.msk.f32.mxu1 %vm2795_vm1, %v2794_v4 }
0x2080   :  { %2626 = vmatprep.subr.mxu1 %v2794_v4 }
0x2081   :  { %2627 = vmatpush3.msra.mxu1 %v3160_v21 }
0x2082   :  { %2628 = vmatprep.subr.mxu1 %v2794_v4 }
0x2083   :  { %2629 = vmatpush3.msra.mxu1 %v3167_v22 }
0x2084   :  { %2630 = vmatprep.subr.mxu1 %v2794_v4 }
0x2085   :  { %2631 = vmatpush3.msra.mxu1 %v3174_v23  ;;  %v1829_v23 = vsel %vm3080_vm6, %v1816_v52, %v1721_v44  ;;  %v2156_v52 = vld [vmem:[%s3416_s8 + $0x18] sm:$0xff] }
0x213e   :  { %v1902_v59 = vpop.f32.mrf.mxu1 }
0x213f   :  { %v1906_v20 = vadd.f32 %v1902_v59, %v1270_v57 }
0x2140   :  { %v2612_v60 = vpop.f32.mrf.mxu1 }
0x2141   :  { %2755 = vtanh.f32 %v1906_v20  ;;  %v2300_v62 = vmul.f32 -1.442695, %v1906_v20  ;;  %v2308_v20 = vld [vmem:[#allocation4] ss:$0 sm:$0xff] }
0x2143   :  { %2757 = vpow2.f32 %v2300_v62 }
0x214e   :  { %v2756_v61 = vpop.eup %2755 }
0x214f   :  { %1916 = vrot.lane.b32.xlu0 %v2756_v61, %s2796_s18 }
0x2150   :  { %v2758_v21 = vpop.eup %2757 }
0x2151   :  { %v1910_v0 = vadd.f32 1.0, %v2758_v21 }
0x2153   :  { %2759 = vrcp.f32 %v1910_v0 }
0x2160   :  { %v2760_v22 = vpop.eup %2759 }
0x2161   :  { %v1914_v43 = vmul.f32 %v2760_v22, %v1829_v23 }
0x21c1   :  { %v1917_v1 = vpop.permute.xlu0 %1916 }
0x21c2   :  { %v1919_v2 = vmul.f32 %v2760_v22, %v1917_v1 }
0x21c4   :  { %1921 = vrot.lane.b32.xlu1 %v1919_v2, %s2796_s18 }
0x2236   :  { %v1922_v6 = vpop.permute.xlu1 %1921 }
0x2237   :  { %v1924_v14 = vadd.f32 %v1922_v6, %v1914_v43 }
0x2239   :  { %2761 = vtanh.f32 %v1924_v14  ;;  %v1937_v47 = vsel %vm3110_vm7, %v1924_v14, %v1829_v23 }
0x2246   :  { %v2762_v15 = vpop.eup %2761 }
0x2247   :  { %1927 = vrot.lane.b32.xlu0 %v2762_v15, %s2796_s18 }
0x22b9   :  { %v1928_v63 = vpop.permute.xlu0 %1927 }
0x22ba   :  { %v1930_v16 = vmul.f32 %v2760_v22, %v1928_v63 }
0x22bc   :  { %v1936_v17 = vsel %vm3110_vm7, %v1930_v16, %v1828_v56 }
0x22bd   :  { %1940 = vrot.lane.b32.xlu1 %v1936_v17, %s2797_s19 }
0x232f   :  { %v1941_v8 = vpop.permute.xlu1 %1940 }
0x2330   :  { %2622 = vmatmul.mubr.msk.f32.vlgmr.msra.gmra.mxu0 %vm71_vm0, %v1941_v8 }
0x2331   :  { %2643 = vmatprep.mubr.msk.f32.mxu0 %vm2795_vm1, %v2794_v4  ;;  %2636 = vmatpush3.msra.mxu0 %v2156_v52 }
0x2332   :  { %2637 = vmatprep.subr.mxu0 %v2794_v4 }
0x2333   :  { %2638 = vmatpush3.msra.mxu0 %v2155_v53 }
0x2334   :  { %2639 = vmatprep.subr.mxu0 %v2794_v4 }
0x2335   :  { %2640 = vmatpush3.msra.mxu0 %v2154_v3 }
0x2336   :  { %2641 = vmatprep.subr.mxu0 %v2794_v4 }
0x2337   :  { %2642 = vmatpush3.msra.mxu0 %v2153_v54 }
0x23f0   :  { %v2010_v18 = vpop.f32.mrf.mxu0 }
0x23f1   :  { %v2014_v19 = vadd.f32 %v2010_v18, %v1275_v25 }
0x23f2   :  { %v2623_v24 = vpop.f32.mrf.mxu0 }
0x23f3   :  { %2763 = vtanh.f32 %v2014_v19  ;;  %v2303_v27 = vmul.f32 -1.442695, %v2014_v19 }
0x23f5   :  { %2765 = vpow2.f32 %v2303_v27 }
0x2400   :  { %v2764_v26 = vpop.eup %2763 }
0x2401   :  { %2024 = vrot.lane.b32.xlu0 %v2764_v26, %s2796_s18 }
0x2402   :  { %v2766_v31 = vpop.eup %2765 }
0x2403   :  { %v2018_v29 = vadd.f32 1.0, %v2766_v31 }
0x2405   :  { %2767 = vrcp.f32 %v2018_v29 }
0x2412   :  { %v2768_v28 = vpop.eup %2767 }
0x2413   :  { %v2022_v5 = vmul.f32 %v2768_v28, %v1937_v47 }
0x2473   :  { %v2025_v30 = vpop.permute.xlu0 %2024 }
0x2474   :  { %v2027_v32 = vmul.f32 %v2768_v28, %v2025_v30 }
0x2476   :  { %2029 = vrot.lane.b32.xlu1 %v2027_v32, %s2796_s18 }
0x24e8   :  { %v2030_v33 = vpop.permute.xlu1 %2029 }
0x24e9   :  { %v2032_v9 = vadd.f32 %v2030_v33, %v2022_v5 }
0x24eb   :  { %2769 = vtanh.f32 %v2032_v9  ;;  %v2045_v11 = vsel %vm3180_vm8, %v2032_v9, %v1937_v47 }
0x24f8   :  { %v2770_v36 = vpop.eup %2769 }
0x24f9   :  { %2035 = vrot.lane.b32.xlu0 %v2770_v36, %s2796_s18 }
0x256b   :  { %v2036_v37 = vpop.permute.xlu0 %2035 }
0x256c   :  { %v2038_v7 = vmul.f32 %v2768_v28, %v2036_v37 }
0x256e   :  { %v2044_v34 = vsel %vm3180_vm8, %v2038_v7, %v1936_v17 }
0x256f   :  { %2048 = vrot.lane.b32.xlu1 %v2044_v34, %s2797_s19 }
0x25e1   :  { %v2049_v38 = vpop.permute.xlu1 %2048 }
0x25e2   :  { %2633 = vmatmul.mubr.msk.f32.vlgmr.msra.gmra.mxu1 %vm71_vm0, %v2049_v38 }
0x26a2   :  { %v2118_v39 = vpop.f32.mrf.mxu1 }
0x26a3   :  { %v2122_v40 = vadd.f32 %v2118_v39, %v1280_v46 }
0x26a4   :  { %v2634_v41 = vpop.f32.mrf.mxu1 }
0x26a5   :  { %2771 = vtanh.f32 %v2122_v40  ;;  %v2306_v10 = vmul.f32 -1.442695, %v2122_v40 }
0x26a7   :  { %2773 = vpow2.f32 %v2306_v10 }
0x26b2   :  { %v2772_v13 = vpop.eup %2771 }
0x26b3   :  { %2132 = vrot.lane.b32.xlu0 %v2772_v13, %s2796_s18 }
0x26b4   :  { %v2774_v35 = vpop.eup %2773 }
0x26b5   :  { %v2126_v42 = vadd.f32 1.0, %v2774_v35 }
0x26b7   :  { %2775 = vrcp.f32 %v2126_v42 }
0x26c4   :  { %v2776_v48 = vpop.eup %2775 }
0x26c5   :  { %v2130_v45 = vmul.f32 %v2776_v48, %v2045_v11 }
0x2725   :  { %v2133_v49 = vpop.permute.xlu0 %2132 }
0x2726   :  { %v2135_v44 = vmul.f32 %v2776_v48, %v2133_v49 }
0x2728   :  { %2137 = vrot.lane.b32.xlu1 %v2135_v44, %s2796_s18 }
0x279a   :  { %v2138_v50 = vpop.permute.xlu1 %2137 }
0x279b   :  { %v2140_v51 = vadd.f32 %v2138_v50, %v2130_v45 }
0x279d   :  { %2777 = vtanh.f32 %v2140_v51 }
0x27aa   :  { %v2778_v55 = vpop.eup %2777 }
0x27ab   :  { %2143 = vrot.lane.b32.xlu0 %v2778_v55, %s2796_s18 }
0x281d   :  { %v2144_v56 = vpop.permute.xlu0 %2143 }
0x281e   :  { %v2146_v58 = vmul.f32 %v2776_v48, %v2144_v56 }
0x2820   :  { %v2152_v57 = vsel %vm3253_vm9, %v2146_v58, %v2044_v34 }
0x2821   :  { %2165 = vrot.lane.b32.xlu1 %v2152_v57, %s2797_s19 }
0x2893   :  { %v2166_v59 = vpop.permute.xlu1 %2165 }
0x2894   :  { %2644 = vmatmul.mubr.msk.f32.vlgmr.msra.gmra.mxu0 %vm71_vm0, %v2166_v59 }
0x2954   :  { %v2235_v60 = vpop.f32.mrf.mxu0 }
0x2955   :  { %v2236_v61 = vadd.f32 %v2308_v20, %v2235_v60 }
0x2956   :  { %v2645_v62 = vpop.f32.mrf.mxu0 }
0x2957   :  { %2240 = vst.msk [vmem:[%s3418_s10] sm:$0xff] %vm2239_vm10, %v2236_v61 }
0x2958   :  { %2245 = vsyncpa [#allocation6], 1 }

</bundles_post_ra>
